<compile_context>
chip_gen: v5e
topology: v5e:2x2
jax: 0.10.0
libtpu: 0.0.40
codegen_flags: <defaults>
</compile_context>

<pallas_src>
import jax
import jax.numpy as jnp
import numpy as np
from jax.experimental import pallas as pl
from jax.experimental.pallas import tpu as pltpu

_LN_EPS = 1e-12
_DMA_UNROLL = 8  # rows issued per scalar-loop iteration of the gather start loop


def bert_embeddings_forward(params, input_ids, token_type_ids=None, *,
                            seq_tile=None, out_dtype=None):
    """params: dict(word [V,H], pos [P,H], tok [TV,H], gamma [H], beta [H]).
    input_ids / token_type_ids: [B, S] integer arrays. Returns [B, S, H]."""
    B, S = input_ids.shape
    word = params["word"]
    pos_table = params["pos"]
    tok = params["tok"]
    V, H = word.shape
    TV = tok.shape[0]
    assert pos_table.shape[0] >= S, "sequence longer than max_position_embeddings"

    if token_type_ids is None:
        token_type_ids = jnp.zeros_like(input_ids)

    # Row tile over the sequence axis (multiple of 8, as large as divides S, <=512).
    if seq_tile is None:
        ts = S
        for cand in (512, 256, 128, 64, 32, 16, 8):
            if S % cand == 0:
                ts = cand
                break
    else:
        ts = seq_tile
    # TODO(synk): pad ragged sequence lengths instead of asserting divisibility.
    assert S % ts == 0 and ts % 8 == 0, "S must be a multiple of 8 for this kernel"
    n_blocks = S // ts
    N = B * S

    ids_flat = input_ids.reshape(N).astype(jnp.int32)          # scalar-prefetch (SMEM)
    tt_col = token_type_ids.reshape(N, 1).astype(jnp.int32)    # per-row, lane dim = 1
    pos_slice = jax.lax.slice_in_dim(pos_table, 0, S, axis=0)  # [S, H] (static slice)
    gamma = params["gamma"].reshape(1, H)
    beta = params["beta"].reshape(1, H)
    dtype = out_dtype or word.dtype

    unroll = _DMA_UNROLL if ts % _DMA_UNROLL == 0 else 1

    def kernel(ids_ref, word_hbm, pos_ref, tok_ref, g_ref, beta_ref, tt_ref,
               o_ref, wbuf, sem):
        # Grid = (seq_tiles, batch): outer axis "parallel" (megacore on v7x), inner
        # "arbitrary" (the cross-step double-buffered gather carries state across it).
        j = pl.program_id(0)   # sequence tile
        b = pl.program_id(1)   # batch row

        def issue_gather(row_base, dst_off, sem_ref):
            # ts row-granular HBM->VMEM copies; unrolled x8 so the scalar/misc VLIW
            # slots pipeline SMEM id load + descriptor issue.
            @pl.loop(0, ts // unroll)
            def _(g):
                r0 = g * unroll
                for u in range(unroll):        # static unroll
                    r = r0 + u
                    row = ids_ref[row_base + r]
                    pltpu.make_async_copy(
                        word_hbm.at[pl.ds(row, 1), :],
                        wbuf.at[pl.ds(dst_off + r, 1), :],
                        sem_ref).start()

        slot = b % 2
        base_cur = b * S + j * ts

        # First inner step of each seq-tile: the current gather is exposed; issue it now.
        @pl.when(b == 0)
        def _():
            issue_gather(base_cur, 0, sem.at[0])

        # Prefetch the next batch row's word rows into the other slot so those DMAs
        # overlap with this step's LayerNorm compute + output writeback.  Never crosses
        # the outer (parallel) axis, so every started DMA is waited on by this core.
        @pl.when(b + 1 < B)
        def _():
            nslot = (b + 1) % 2
            issue_gather((b + 1) * S + j * ts, nslot * ts, sem.at[nslot])

        # Single aggregate wait for the whole current slot.  The descriptor's byte
        # count (ts * H * itemsize) equals the sum of the ts issued per-row copies,
        # so the semaphore is decremented exactly; the src ref is only used for sizing.
        off = pl.multiple_of(slot * ts, ts)
        pltpu.make_async_copy(word_hbm.at[pl.ds(0, ts), :],
                              wbuf.at[pl.ds(off, ts), :],
                              sem.at[slot]).wait()

        words = wbuf[pl.ds(off, ts), :].astype(jnp.float32)   # (ts, H) gathered rows
        posv = pos_ref[...].astype(jnp.float32)               # (ts, H) contiguous positions

        # --- token-type embedding ---
        ttv = tt_ref[...]                                      # (ts, 1) int32
        tok_tab = tok_ref[...].astype(jnp.float32)             # (TV, H)
        if TV == 2:
            # lerp: one mul + one add on the VPU instead of TV selects+adds.
            t0 = tok_tab[0:1, :]
            t1 = tok_tab[1:2, :]
            tok_emb = t0 + ttv.astype(jnp.float32) * (t1 - t0)
        else:
            tok_emb = jnp.zeros_like(words)
            for t in range(TV):                                # TV small and static
                tok_emb = tok_emb + jnp.where(ttv == t, tok_tab[t:t + 1, :], 0.0)

        # --- sum + LayerNorm (f32 statistics, eps inside the sqrt) ---
        x = words + posv + tok_emb
        mu = jnp.mean(x, axis=-1, keepdims=True)
        var = jnp.mean(jnp.square(x - mu), axis=-1, keepdims=True)
        y = (x - mu) * jax.lax.rsqrt(var + _LN_EPS)
        y = y * g_ref[...].astype(jnp.float32) + beta_ref[...].astype(jnp.float32)
        # dropout: identity in eval mode.
        o_ref[...] = y.astype(o_ref.dtype)

    out = pl.pallas_call(
        kernel,
        out_shape=jax.ShapeDtypeStruct((N, H), dtype),
        grid_spec=pltpu.PrefetchScalarGridSpec(
            num_scalar_prefetch=1,
            grid=(n_blocks, B),
            in_specs=[
                pl.BlockSpec(memory_space=pl.ANY),                       # word table (HBM)
                pl.BlockSpec((ts, H), lambda j, b, ids: (j, 0)),          # position rows (resident across b)
                pl.BlockSpec((TV, H), lambda j, b, ids: (0, 0)),          # token-type table
                pl.BlockSpec((1, H), lambda j, b, ids: (0, 0)),           # LN gamma
                pl.BlockSpec((1, H), lambda j, b, ids: (0, 0)),           # LN beta
                pl.BlockSpec((ts, 1), lambda j, b, ids: (b * n_blocks + j, 0)),  # token types
            ],
            out_specs=pl.BlockSpec((ts, H), lambda j, b, ids: (b * n_blocks + j, 0)),
            scratch_shapes=[
                pltpu.VMEM((2 * ts, H), word.dtype),   # double-buffered gathered rows
                pltpu.SemaphoreType.DMA((2,)),         # one DMA sem per slot
            ],
        ),
        compiler_params=pltpu.CompilerParams(
            dimension_semantics=("parallel", "arbitrary")),
    )(ids_flat, word, pos_slice, tok, gamma, beta, tt_col)

    return out.reshape(B, S, H)


# ----------------------------------------------------------------------------
# Parameter construction (deterministic, synthetic).
# ----------------------------------------------------------------------------
def init_params(key, *, vocab, hidden, max_pos, type_vocab):
    kw, kp, kt = jax.random.split(key, 3)
    word = jax.random.normal(kw, (vocab, hidden), jnp.float32) * 0.02
    word = word.at[0].set(0.0)  # nn.Embedding(padding_idx=0): row 0 is zeros
    pos = jax.random.normal(kp, (max_pos, hidden), jnp.float32) * 0.02
    tok = jax.random.normal(kt, (type_vocab, hidden), jnp.float32) * 0.02
    return dict(word=word, pos=pos, tok=tok,
                gamma=jnp.ones((hidden,), jnp.float32),
                beta=jnp.zeros((hidden,), jnp.float32))


# ----------------------------------------------------------------------------
# Pure-JAX reference for correctness checking.
# ----------------------------------------------------------------------------
def _ref_forward(params, input_ids, token_type_ids):
    S = input_ids.shape[1]
    words = params["word"][input_ids]
    pos = params["pos"][jnp.arange(S)][None, :, :]
    tokt = params["tok"][token_type_ids]
    x = words + pos + tokt
    mu = x.mean(-1, keepdims=True)
    var = ((x - mu) ** 2).mean(-1, keepdims=True)
    x = (x - mu) / jnp.sqrt(var + _LN_EPS)
    return params["gamma"] * x + params["beta"]


if __name__ == "__main__":
    # Small synthetic shapes (the real module uses vocab=30522, hidden=768,
    # max_position_embeddings=512, type_vocab_size=2 — structure is identical).
    B, S, H = 2, 8, 128
    VOCAB, MAX_POS, TYPE_VOCAB = 512, 64, 2

    key = jax.random.PRNGKey(0)
    k_par, k_ids, k_tt = jax.random.split(key, 3)

    params = init_params(k_par, vocab=VOCAB, hidden=H,
                         max_pos=MAX_POS, type_vocab=TYPE_VOCAB)

    input_ids = jax.random.randint(k_ids, (B, S), 0, VOCAB, dtype=jnp.int32)
    token_type_ids = jax.random.randint(k_tt, (B, S), 0, TYPE_VOCAB, dtype=jnp.int32)

    out = jax.block_until_ready(
        bert_embeddings_forward(params, input_ids, token_type_ids))
    assert out.shape == (B, S, H)
    ref = _ref_forward(params, input_ids, token_type_ids)
    np.testing.assert_allclose(np.asarray(out), np.asarray(ref), rtol=1e-4, atol=1e-4)

    # Second config: multiple sequence tiles per batch row -> exercises the
    # double-buffered gather, the aggregate wait on both slots, and position-tile
    # residency across the inner batch axis.
    S2 = 32
    k_ids2, k_tt2 = jax.random.split(jax.random.PRNGKey(1), 2)
    ids2 = jax.random.randint(k_ids2, (B, S2), 0, VOCAB, dtype=jnp.int32)
    tt2 = jax.random.randint(k_tt2, (B, S2), 0, TYPE_VOCAB, dtype=jnp.int32)
    out2 = jax.block_until_ready(
        bert_embeddings_forward(params, ids2, tt2, seq_tile=8))
    ref2 = _ref_forward(params, ids2, tt2)
    np.testing.assert_allclose(np.asarray(out2), np.asarray(ref2), rtol=1e-4, atol=1e-4)

    print("KERNEL_OK")
</pallas_src>

<mosaic_0001>
module attributes {stable_mosaic.version = 11 : i64} {
  func.func @kernel(%arg0: i32, %arg1: i32, %arg2: memref<16xi32, #tpu.memory_space<smem>>, %arg3: memref<512x128xf32, #tpu.memory_space<any>>, %arg4: memref<8x128xf32, #tpu.memory_space<vmem>>, %arg5: memref<2x128xf32, #tpu.memory_space<vmem>>, %arg6: memref<1x128xf32, #tpu.memory_space<vmem>>, %arg7: memref<1x128xf32, #tpu.memory_space<vmem>>, %arg8: memref<8x1xi32, #tpu.memory_space<vmem>>, %arg9: memref<8x128xf32, #tpu.memory_space<vmem>>, %arg10: memref<16x128xf32, #tpu.memory_space<vmem>>, %arg11: memref<2x!tpu.dma_semaphore, #tpu.memory_space<semaphore_mem>>) attributes {dimension_semantics = [#tpu.dimension_semantics<parallel>, #tpu.dimension_semantics<arbitrary>], iteration_bounds = array<i64: 1, 2>, scalar_prefetch = 1 : i64, scratch_operands = 2 : i64, tpu.core_type = #tpu.core_type<tc>, window_params = [{}, {transform_indices = @transform_1, window_bounds = array<i64: 8, 128>}, {pipeline_mode = #tpu.pipeline_mode<synchronous>, transform_indices = @transform_2, window_bounds = array<i64: 2, 128>}, {pipeline_mode = #tpu.pipeline_mode<synchronous>, transform_indices = @transform_3, window_bounds = array<i64: 1, 128>}, {pipeline_mode = #tpu.pipeline_mode<synchronous>, transform_indices = @transform_4, window_bounds = array<i64: 1, 128>}, {transform_indices = @transform_5, window_bounds = array<i64: 8, 1>}, {transform_indices = @transform_6, window_bounds = array<i64: 8, 128>}]} {
    %c2_i32 = arith.constant 2 : i32
    %c0_i32 = arith.constant 0 : i32
    %0 = arith.cmpi eq, %c2_i32, %c0_i32 : i32
    %c1_i32 = arith.constant 1 : i32
    %1 = arith.select %0, %c1_i32, %c2_i32 : i32
    %2 = arith.remsi %arg1, %1 : i32
    %c0_i32_0 = arith.constant 0 : i32
    %3 = arith.cmpi ne, %2, %c0_i32_0 : i32
    %c0_i32_1 = arith.constant 0 : i32
    %4 = arith.cmpi slt, %2, %c0_i32_1 : i32
    %c0_i32_2 = arith.constant 0 : i32
    %5 = arith.cmpi slt, %1, %c0_i32_2 : i32
    %6 = arith.xori %4, %5 : i1
    %7 = arith.andi %6, %3 : i1
    %8 = arith.addi %2, %1 : i32
    %9 = arith.select %7, %8, %2 : i32
    %c8_i32 = arith.constant 8 : i32
    %10 = arith.muli %arg1, %c8_i32 : i32
    %c8_i32_3 = arith.constant 8 : i32
    %11 = arith.muli %arg0, %c8_i32_3 : i32
    %12 = arith.addi %10, %11 : i32
    %c0_i32_4 = arith.constant 0 : i32
    %13 = arith.cmpi eq, %arg1, %c0_i32_4 : i32
    %14 = arith.extui %13 : i1 to i32
    %c0_i32_5 = arith.constant 0 : i32
    %15 = arith.cmpi ne, %14, %c0_i32_5 : i32
    scf.if %15 {
      %c0_i32_29 = arith.constant 0 : i32
      %c0_i32_30 = arith.constant 0 : i32
      %c1_i32_31 = arith.constant 1 : i32
      %67 = arith.muli %c0_i32_30, %c1_i32_31 : i32
      %c0_i32_32 = arith.constant 0 : i32
      %68 = arith.addi %c0_i32_32, %67 : i32
      %c8_i32_33 = arith.constant 8 : i32
      %69 = arith.muli %68, %c8_i32_33 : i32
      %c0_i32_34 = arith.constant 0 : i32
      %70 = arith.addi %69, %c0_i32_34 : i32
      %71 = arith.addi %12, %70 : i32
      %72 = arith.index_cast %71 : i32 to index
      %73 = memref.load %arg2[%72] : memref<16xi32, #tpu.memory_space<smem>>
      %c0_i32_35 = arith.constant 0 : i32
      %74 = arith.addi %c0_i32_35, %70 : i32
      %c0_i32_36 = arith.constant 0 : i32
      %75 = tpu.memref_slice %arg3[%73, %c0_i32_36] : memref<512x128xf32, #tpu.memory_space<any>> -> memref<1x128xf32, #tpu.memory_space<any>>
      %c0_i32_37 = arith.constant 0 : i32
      %76 = tpu.memref_slice %arg10[%74, %c0_i32_37] : memref<16x128xf32, #tpu.memory_space<vmem>> -> memref<1x128xf32, #tpu.memory_space<vmem>>
      %77 = tpu.memref_slice %arg11[%c0_i32_29] : memref<2x!tpu.dma_semaphore, #tpu.memory_space<semaphore_mem>> -> memref<1x!tpu.dma_semaphore, #tpu.memory_space<semaphore_mem>>
      %78 = tpu.memref_squeeze %77 : memref<1x!tpu.dma_semaphore, #tpu.memory_space<semaphore_mem>> -> memref<!tpu.dma_semaphore, #tpu.memory_space<semaphore_mem>>
      tpu.enqueue_dma source(%75 : memref<1x128xf32, #tpu.memory_space<any>>) target(%76 : memref<1x128xf32, #tpu.memory_space<vmem>>) target_semaphore(%78 : memref<!tpu.dma_semaphore, #tpu.memory_space<semaphore_mem>>)
      %c1_i32_38 = arith.constant 1 : i32
      %79 = arith.addi %69, %c1_i32_38 : i32
      %80 = arith.addi %12, %79 : i32
      %81 = arith.index_cast %80 : i32 to index
      %82 = memref.load %arg2[%81] : memref<16xi32, #tpu.memory_space<smem>>
      %c0_i32_39 = arith.constant 0 : i32
      %83 = arith.addi %c0_i32_39, %79 : i32
      %c0_i32_40 = arith.constant 0 : i32
      %84 = tpu.memref_slice %arg3[%82, %c0_i32_40] : memref<512x128xf32, #tpu.memory_space<any>> -> memref<1x128xf32, #tpu.memory_space<any>>
      %c0_i32_41 = arith.constant 0 : i32
      %85 = tpu.memref_slice %arg10[%83, %c0_i32_41] : memref<16x128xf32, #tpu.memory_space<vmem>> -> memref<1x128xf32, #tpu.memory_space<vmem>>
      %86 = tpu.memref_slice %arg11[%c0_i32_29] : memref<2x!tpu.dma_semaphore, #tpu.memory_space<semaphore_mem>> -> memref<1x!tpu.dma_semaphore, #tpu.memory_space<semaphore_mem>>
      %87 = tpu.memref_squeeze %86 : memref<1x!tpu.dma_semaphore, #tpu.memory_space<semaphore_mem>> -> memref<!tpu.dma_semaphore, #tpu.memory_space<semaphore_mem>>
      tpu.enqueue_dma source(%84 : memref<1x128xf32, #tpu.memory_space<any>>) target(%85 : memref<1x128xf32, #tpu.memory_space<vmem>>) target_semaphore(%87 : memref<!tpu.dma_semaphore, #tpu.memory_space<semaphore_mem>>)
      %c2_i32_42 = arith.constant 2 : i32
      %88 = arith.addi %69, %c2_i32_42 : i32
      %89 = arith.addi %12, %88 : i32
      %90 = arith.index_cast %89 : i32 to index
      %91 = memref.load %arg2[%90] : memref<16xi32, #tpu.memory_space<smem>>
      %c0_i32_43 = arith.constant 0 : i32
      %92 = arith.addi %c0_i32_43, %88 : i32
      %c0_i32_44 = arith.constant 0 : i32
      %93 = tpu.memref_slice %arg3[%91, %c0_i32_44] : memref<512x128xf32, #tpu.memory_space<any>> -> memref<1x128xf32, #tpu.memory_space<any>>
      %c0_i32_45 = arith.constant 0 : i32
      %94 = tpu.memref_slice %arg10[%92, %c0_i32_45] : memref<16x128xf32, #tpu.memory_space<vmem>> -> memref<1x128xf32, #tpu.memory_space<vmem>>
      %95 = tpu.memref_slice %arg11[%c0_i32_29] : memref<2x!tpu.dma_semaphore, #tpu.memory_space<semaphore_mem>> -> memref<1x!tpu.dma_semaphore, #tpu.memory_space<semaphore_mem>>
      %96 = tpu.memref_squeeze %95 : memref<1x!tpu.dma_semaphore, #tpu.memory_space<semaphore_mem>> -> memref<!tpu.dma_semaphore, #tpu.memory_space<semaphore_mem>>
      tpu.enqueue_dma source(%93 : memref<1x128xf32, #tpu.memory_space<any>>) target(%94 : memref<1x128xf32, #tpu.memory_space<vmem>>) target_semaphore(%96 : memref<!tpu.dma_semaphore, #tpu.memory_space<semaphore_mem>>)
      %c3_i32 = arith.constant 3 : i32
      %97 = arith.addi %69, %c3_i32 : i32
      %98 = arith.addi %12, %97 : i32
      %99 = arith.index_cast %98 : i32 to index
      %100 = memref.load %arg2[%99] : memref<16xi32, #tpu.memory_space<smem>>
      %c0_i32_46 = arith.constant 0 : i32
      %101 = arith.addi %c0_i32_46, %97 : i32
      %c0_i32_47 = arith.constant 0 : i32
      %102 = tpu.memref_slice %arg3[%100, %c0_i32_47] : memref<512x128xf32, #tpu.memory_space<any>> -> memref<1x128xf32, #tpu.memory_space<any>>
      %c0_i32_48 = arith.constant 0 : i32
      %103 = tpu.memref_slice %arg10[%101, %c0_i32_48] : memref<16x128xf32, #tpu.memory_space<vmem>> -> memref<1x128xf32, #tpu.memory_space<vmem>>
      %104 = tpu.memref_slice %arg11[%c0_i32_29] : memref<2x!tpu.dma_semaphore, #tpu.memory_space<semaphore_mem>> -> memref<1x!tpu.dma_semaphore, #tpu.memory_space<semaphore_mem>>
      %105 = tpu.memref_squeeze %104 : memref<1x!tpu.dma_semaphore, #tpu.memory_space<semaphore_mem>> -> memref<!tpu.dma_semaphore, #tpu.memory_space<semaphore_mem>>
      tpu.enqueue_dma source(%102 : memref<1x128xf32, #tpu.memory_space<any>>) target(%103 : memref<1x128xf32, #tpu.memory_space<vmem>>) target_semaphore(%105 : memref<!tpu.dma_semaphore, #tpu.memory_space<semaphore_mem>>)
      %c4_i32 = arith.constant 4 : i32
      %106 = arith.addi %69, %c4_i32 : i32
      %107 = arith.addi %12, %106 : i32
      %108 = arith.index_cast %107 : i32 to index
      %109 = memref.load %arg2[%108] : memref<16xi32, #tpu.memory_space<smem>>
      %c0_i32_49 = arith.constant 0 : i32
      %110 = arith.addi %c0_i32_49, %106 : i32
      %c0_i32_50 = arith.constant 0 : i32
      %111 = tpu.memref_slice %arg3[%109, %c0_i32_50] : memref<512x128xf32, #tpu.memory_space<any>> -> memref<1x128xf32, #tpu.memory_space<any>>
      %c0_i32_51 = arith.constant 0 : i32
      %112 = tpu.memref_slice %arg10[%110, %c0_i32_51] : memref<16x128xf32, #tpu.memory_space<vmem>> -> memref<1x128xf32, #tpu.memory_space<vmem>>
      %113 = tpu.memref_slice %arg11[%c0_i32_29] : memref<2x!tpu.dma_semaphore, #tpu.memory_space<semaphore_mem>> -> memref<1x!tpu.dma_semaphore, #tpu.memory_space<semaphore_mem>>
      %114 = tpu.memref_squeeze %113 : memref<1x!tpu.dma_semaphore, #tpu.memory_space<semaphore_mem>> -> memref<!tpu.dma_semaphore, #tpu.memory_space<semaphore_mem>>
      tpu.enqueue_dma source(%111 : memref<1x128xf32, #tpu.memory_space<any>>) target(%112 : memref<1x128xf32, #tpu.memory_space<vmem>>) target_semaphore(%114 : memref<!tpu.dma_semaphore, #tpu.memory_space<semaphore_mem>>)
      %c5_i32 = arith.constant 5 : i32
      %115 = arith.addi %69, %c5_i32 : i32
      %116 = arith.addi %12, %115 : i32
      %117 = arith.index_cast %116 : i32 to index
      %118 = memref.load %arg2[%117] : memref<16xi32, #tpu.memory_space<smem>>
      %c0_i32_52 = arith.constant 0 : i32
      %119 = arith.addi %c0_i32_52, %115 : i32
      %c0_i32_53 = arith.constant 0 : i32
      %120 = tpu.memref_slice %arg3[%118, %c0_i32_53] : memref<512x128xf32, #tpu.memory_space<any>> -> memref<1x128xf32, #tpu.memory_space<any>>
      %c0_i32_54 = arith.constant 0 : i32
      %121 = tpu.memref_slice %arg10[%119, %c0_i32_54] : memref<16x128xf32, #tpu.memory_space<vmem>> -> memref<1x128xf32, #tpu.memory_space<vmem>>
      %122 = tpu.memref_slice %arg11[%c0_i32_29] : memref<2x!tpu.dma_semaphore, #tpu.memory_space<semaphore_mem>> -> memref<1x!tpu.dma_semaphore, #tpu.memory_space<semaphore_mem>>
      %123 = tpu.memref_squeeze %122 : memref<1x!tpu.dma_semaphore, #tpu.memory_space<semaphore_mem>> -> memref<!tpu.dma_semaphore, #tpu.memory_space<semaphore_mem>>
      tpu.enqueue_dma source(%120 : memref<1x128xf32, #tpu.memory_space<any>>) target(%121 : memref<1x128xf32, #tpu.memory_space<vmem>>) target_semaphore(%123 : memref<!tpu.dma_semaphore, #tpu.memory_space<semaphore_mem>>)
      %c6_i32 = arith.constant 6 : i32
      %124 = arith.addi %69, %c6_i32 : i32
      %125 = arith.addi %12, %124 : i32
      %126 = arith.index_cast %125 : i32 to index
      %127 = memref.load %arg2[%126] : memref<16xi32, #tpu.memory_space<smem>>
      %c0_i32_55 = arith.constant 0 : i32
      %128 = arith.addi %c0_i32_55, %124 : i32
      %c0_i32_56 = arith.constant 0 : i32
      %129 = tpu.memref_slice %arg3[%127, %c0_i32_56] : memref<512x128xf32, #tpu.memory_space<any>> -> memref<1x128xf32, #tpu.memory_space<any>>
      %c0_i32_57 = arith.constant 0 : i32
      %130 = tpu.memref_slice %arg10[%128, %c0_i32_57] : memref<16x128xf32, #tpu.memory_space<vmem>> -> memref<1x128xf32, #tpu.memory_space<vmem>>
      %131 = tpu.memref_slice %arg11[%c0_i32_29] : memref<2x!tpu.dma_semaphore, #tpu.memory_space<semaphore_mem>> -> memref<1x!tpu.dma_semaphore, #tpu.memory_space<semaphore_mem>>
      %132 = tpu.memref_squeeze %131 : memref<1x!tpu.dma_semaphore, #tpu.memory_space<semaphore_mem>> -> memref<!tpu.dma_semaphore, #tpu.memory_space<semaphore_mem>>
      tpu.enqueue_dma source(%129 : memref<1x128xf32, #tpu.memory_space<any>>) target(%130 : memref<1x128xf32, #tpu.memory_space<vmem>>) target_semaphore(%132 : memref<!tpu.dma_semaphore, #tpu.memory_space<semaphore_mem>>)
      %c7_i32 = arith.constant 7 : i32
      %133 = arith.addi %69, %c7_i32 : i32
      %134 = arith.addi %12, %133 : i32
      %135 = arith.index_cast %134 : i32 to index
      %136 = memref.load %arg2[%135] : memref<16xi32, #tpu.memory_space<smem>>
      %c0_i32_58 = arith.constant 0 : i32
      %137 = arith.addi %c0_i32_58, %133 : i32
      %c0_i32_59 = arith.constant 0 : i32
      %138 = tpu.memref_slice %arg3[%136, %c0_i32_59] : memref<512x128xf32, #tpu.memory_space<any>> -> memref<1x128xf32, #tpu.memory_space<any>>
      %c0_i32_60 = arith.constant 0 : i32
      %139 = tpu.memref_slice %arg10[%137, %c0_i32_60] : memref<16x128xf32, #tpu.memory_space<vmem>> -> memref<1x128xf32, #tpu.memory_space<vmem>>
      %140 = tpu.memref_slice %arg11[%c0_i32_29] : memref<2x!tpu.dma_semaphore, #tpu.memory_space<semaphore_mem>> -> memref<1x!tpu.dma_semaphore, #tpu.memory_space<semaphore_mem>>
      %141 = tpu.memref_squeeze %140 : memref<1x!tpu.dma_semaphore, #tpu.memory_space<semaphore_mem>> -> memref<!tpu.dma_semaphore, #tpu.memory_space<semaphore_mem>>
      tpu.enqueue_dma source(%138 : memref<1x128xf32, #tpu.memory_space<any>>) target(%139 : memref<1x128xf32, #tpu.memory_space<vmem>>) target_semaphore(%141 : memref<!tpu.dma_semaphore, #tpu.memory_space<semaphore_mem>>)
      %c1_i32_61 = arith.constant 1 : i32
    } else {
    }
    %c1_i32_6 = arith.constant 1 : i32
    %16 = arith.addi %arg1, %c1_i32_6 : i32
    %c2_i32_7 = arith.constant 2 : i32
    %17 = arith.cmpi slt, %16, %c2_i32_7 : i32
    %18 = arith.extui %17 : i1 to i32
    %c0_i32_8 = arith.constant 0 : i32
    %19 = arith.cmpi ne, %18, %c0_i32_8 : i32
    scf.if %19 {
      %c1_i32_29 = arith.constant 1 : i32
      %67 = arith.addi %arg1, %c1_i32_29 : i32
      %c2_i32_30 = arith.constant 2 : i32
      %c0_i32_31 = arith.constant 0 : i32
      %68 = arith.cmpi eq, %c2_i32_30, %c0_i32_31 : i32
      %c1_i32_32 = arith.constant 1 : i32
      %69 = arith.select %68, %c1_i32_32, %c2_i32_30 : i32
      %70 = arith.remsi %67, %69 : i32
      %c0_i32_33 = arith.constant 0 : i32
      %71 = arith.cmpi ne, %70, %c0_i32_33 : i32
      %c0_i32_34 = arith.constant 0 : i32
      %72 = arith.cmpi slt, %70, %c0_i32_34 : i32
      %c0_i32_35 = arith.constant 0 : i32
      %73 = arith.cmpi slt, %69, %c0_i32_35 : i32
      %74 = arith.xori %72, %73 : i1
      %75 = arith.andi %74, %71 : i1
      %76 = arith.addi %70, %69 : i32
      %77 = arith.select %75, %76, %70 : i32
      %c1_i32_36 = arith.constant 1 : i32
      %78 = arith.addi %arg1, %c1_i32_36 : i32
      %c8_i32_37 = arith.constant 8 : i32
      %79 = arith.muli %78, %c8_i32_37 : i32
      %c8_i32_38 = arith.constant 8 : i32
      %80 = arith.muli %arg0, %c8_i32_38 : i32
      %81 = arith.addi %79, %80 : i32
      %c8_i32_39 = arith.constant 8 : i32
      %82 = arith.muli %77, %c8_i32_39 : i32
      %c0_i32_40 = arith.constant 0 : i32
      %c1_i32_41 = arith.constant 1 : i32
      %83 = arith.muli %c0_i32_40, %c1_i32_41 : i32
      %c0_i32_42 = arith.constant 0 : i32
      %84 = arith.addi %c0_i32_42, %83 : i32
      %c8_i32_43 = arith.constant 8 : i32
      %85 = arith.muli %84, %c8_i32_43 : i32
      %c0_i32_44 = arith.constant 0 : i32
      %86 = arith.addi %85, %c0_i32_44 : i32
      %87 = arith.addi %81, %86 : i32
      %88 = arith.index_cast %87 : i32 to index
      %89 = memref.load %arg2[%88] : memref<16xi32, #tpu.memory_space<smem>>
      %90 = arith.addi %82, %86 : i32
      %c0_i32_45 = arith.constant 0 : i32
      %91 = tpu.memref_slice %arg3[%89, %c0_i32_45] : memref<512x128xf32, #tpu.memory_space<any>> -> memref<1x128xf32, #tpu.memory_space<any>>
      %c0_i32_46 = arith.constant 0 : i32
      %92 = tpu.memref_slice %arg10[%90, %c0_i32_46] : memref<16x128xf32, #tpu.memory_space<vmem>> -> memref<1x128xf32, #tpu.memory_space<vmem>>
      %93 = tpu.memref_slice %arg11[%77] : memref<2x!tpu.dma_semaphore, #tpu.memory_space<semaphore_mem>> -> memref<1x!tpu.dma_semaphore, #tpu.memory_space<semaphore_mem>>
      %94 = tpu.memref_squeeze %93 : memref<1x!tpu.dma_semaphore, #tpu.memory_space<semaphore_mem>> -> memref<!tpu.dma_semaphore, #tpu.memory_space<semaphore_mem>>
      tpu.enqueue_dma source(%91 : memref<1x128xf32, #tpu.memory_space<any>>) target(%92 : memref<1x128xf32, #tpu.memory_space<vmem>>) target_semaphore(%94 : memref<!tpu.dma_semaphore, #tpu.memory_space<semaphore_mem>>)
      %c1_i32_47 = arith.constant 1 : i32
      %95 = arith.addi %85, %c1_i32_47 : i32
      %96 = arith.addi %81, %95 : i32
      %97 = arith.index_cast %96 : i32 to index
      %98 = memref.load %arg2[%97] : memref<16xi32, #tpu.memory_space<smem>>
      %99 = arith.addi %82, %95 : i32
      %c0_i32_48 = arith.constant 0 : i32
      %100 = tpu.memref_slice %arg3[%98, %c0_i32_48] : memref<512x128xf32, #tpu.memory_space<any>> -> memref<1x128xf32, #tpu.memory_space<any>>
      %c0_i32_49 = arith.constant 0 : i32
      %101 = tpu.memref_slice %arg10[%99, %c0_i32_49] : memref<16x128xf32, #tpu.memory_space<vmem>> -> memref<1x128xf32, #tpu.memory_space<vmem>>
      %102 = tpu.memref_slice %arg11[%77] : memref<2x!tpu.dma_semaphore, #tpu.memory_space<semaphore_mem>> -> memref<1x!tpu.dma_semaphore, #tpu.memory_space<semaphore_mem>>
      %103 = tpu.memref_squeeze %102 : memref<1x!tpu.dma_semaphore, #tpu.memory_space<semaphore_mem>> -> memref<!tpu.dma_semaphore, #tpu.memory_space<semaphore_mem>>
      tpu.enqueue_dma source(%100 : memref<1x128xf32, #tpu.memory_space<any>>) target(%101 : memref<1x128xf32, #tpu.memory_space<vmem>>) target_semaphore(%103 : memref<!tpu.dma_semaphore, #tpu.memory_space<semaphore_mem>>)
      %c2_i32_50 = arith.constant 2 : i32
      %104 = arith.addi %85, %c2_i32_50 : i32
      %105 = arith.addi %81, %104 : i32
      %106 = arith.index_cast %105 : i32 to index
      %107 = memref.load %arg2[%106] : memref<16xi32, #tpu.memory_space<smem>>
      %108 = arith.addi %82, %104 : i32
      %c0_i32_51 = arith.constant 0 : i32
      %109 = tpu.memref_slice %arg3[%107, %c0_i32_51] : memref<512x128xf32, #tpu.memory_space<any>> -> memref<1x128xf32, #tpu.memory_space<any>>
      %c0_i32_52 = arith.constant 0 : i32
      %110 = tpu.memref_slice %arg10[%108, %c0_i32_52] : memref<16x128xf32, #tpu.memory_space<vmem>> -> memref<1x128xf32, #tpu.memory_space<vmem>>
      %111 = tpu.memref_slice %arg11[%77] : memref<2x!tpu.dma_semaphore, #tpu.memory_space<semaphore_mem>> -> memref<1x!tpu.dma_semaphore, #tpu.memory_space<semaphore_mem>>
      %112 = tpu.memref_squeeze %111 : memref<1x!tpu.dma_semaphore, #tpu.memory_space<semaphore_mem>> -> memref<!tpu.dma_semaphore, #tpu.memory_space<semaphore_mem>>
      tpu.enqueue_dma source(%109 : memref<1x128xf32, #tpu.memory_space<any>>) target(%110 : memref<1x128xf32, #tpu.memory_space<vmem>>) target_semaphore(%112 : memref<!tpu.dma_semaphore, #tpu.memory_space<semaphore_mem>>)
      %c3_i32 = arith.constant 3 : i32
      %113 = arith.addi %85, %c3_i32 : i32
      %114 = arith.addi %81, %113 : i32
      %115 = arith.index_cast %114 : i32 to index
      %116 = memref.load %arg2[%115] : memref<16xi32, #tpu.memory_space<smem>>
      %117 = arith.addi %82, %113 : i32
      %c0_i32_53 = arith.constant 0 : i32
      %118 = tpu.memref_slice %arg3[%116, %c0_i32_53] : memref<512x128xf32, #tpu.memory_space<any>> -> memref<1x128xf32, #tpu.memory_space<any>>
      %c0_i32_54 = arith.constant 0 : i32
      %119 = tpu.memref_slice %arg10[%117, %c0_i32_54] : memref<16x128xf32, #tpu.memory_space<vmem>> -> memref<1x128xf32, #tpu.memory_space<vmem>>
      %120 = tpu.memref_slice %arg11[%77] : memref<2x!tpu.dma_semaphore, #tpu.memory_space<semaphore_mem>> -> memref<1x!tpu.dma_semaphore, #tpu.memory_space<semaphore_mem>>
      %121 = tpu.memref_squeeze %120 : memref<1x!tpu.dma_semaphore, #tpu.memory_space<semaphore_mem>> -> memref<!tpu.dma_semaphore, #tpu.memory_space<semaphore_mem>>
      tpu.enqueue_dma source(%118 : memref<1x128xf32, #tpu.memory_space<any>>) target(%119 : memref<1x128xf32, #tpu.memory_space<vmem>>) target_semaphore(%121 : memref<!tpu.dma_semaphore, #tpu.memory_space<semaphore_mem>>)
      %c4_i32 = arith.constant 4 : i32
      %122 = arith.addi %85, %c4_i32 : i32
      %123 = arith.addi %81, %122 : i32
      %124 = arith.index_cast %123 : i32 to index
      %125 = memref.load %arg2[%124] : memref<16xi32, #tpu.memory_space<smem>>
      %126 = arith.addi %82, %122 : i32
      %c0_i32_55 = arith.constant 0 : i32
      %127 = tpu.memref_slice %arg3[%125, %c0_i32_55] : memref<512x128xf32, #tpu.memory_space<any>> -> memref<1x128xf32, #tpu.memory_space<any>>
      %c0_i32_56 = arith.constant 0 : i32
      %128 = tpu.memref_slice %arg10[%126, %c0_i32_56] : memref<16x128xf32, #tpu.memory_space<vmem>> -> memref<1x128xf32, #tpu.memory_space<vmem>>
      %129 = tpu.memref_slice %arg11[%77] : memref<2x!tpu.dma_semaphore, #tpu.memory_space<semaphore_mem>> -> memref<1x!tpu.dma_semaphore, #tpu.memory_space<semaphore_mem>>
      %130 = tpu.memref_squeeze %129 : memref<1x!tpu.dma_semaphore, #tpu.memory_space<semaphore_mem>> -> memref<!tpu.dma_semaphore, #tpu.memory_space<semaphore_mem>>
      tpu.enqueue_dma source(%127 : memref<1x128xf32, #tpu.memory_space<any>>) target(%128 : memref<1x128xf32, #tpu.memory_space<vmem>>) target_semaphore(%130 : memref<!tpu.dma_semaphore, #tpu.memory_space<semaphore_mem>>)
      %c5_i32 = arith.constant 5 : i32
      %131 = arith.addi %85, %c5_i32 : i32
      %132 = arith.addi %81, %131 : i32
      %133 = arith.index_cast %132 : i32 to index
      %134 = memref.load %arg2[%133] : memref<16xi32, #tpu.memory_space<smem>>
      %135 = arith.addi %82, %131 : i32
      %c0_i32_57 = arith.constant 0 : i32
      %136 = tpu.memref_slice %arg3[%134, %c0_i32_57] : memref<512x128xf32, #tpu.memory_space<any>> -> memref<1x128xf32, #tpu.memory_space<any>>
      %c0_i32_58 = arith.constant 0 : i32
      %137 = tpu.memref_slice %arg10[%135, %c0_i32_58] : memref<16x128xf32, #tpu.memory_space<vmem>> -> memref<1x128xf32, #tpu.memory_space<vmem>>
      %138 = tpu.memref_slice %arg11[%77] : memref<2x!tpu.dma_semaphore, #tpu.memory_space<semaphore_mem>> -> memref<1x!tpu.dma_semaphore, #tpu.memory_space<semaphore_mem>>
      %139 = tpu.memref_squeeze %138 : memref<1x!tpu.dma_semaphore, #tpu.memory_space<semaphore_mem>> -> memref<!tpu.dma_semaphore, #tpu.memory_space<semaphore_mem>>
      tpu.enqueue_dma source(%136 : memref<1x128xf32, #tpu.memory_space<any>>) target(%137 : memref<1x128xf32, #tpu.memory_space<vmem>>) target_semaphore(%139 : memref<!tpu.dma_semaphore, #tpu.memory_space<semaphore_mem>>)
      %c6_i32 = arith.constant 6 : i32
      %140 = arith.addi %85, %c6_i32 : i32
      %141 = arith.addi %81, %140 : i32
      %142 = arith.index_cast %141 : i32 to index
      %143 = memref.load %arg2[%142] : memref<16xi32, #tpu.memory_space<smem>>
      %144 = arith.addi %82, %140 : i32
      %c0_i32_59 = arith.constant 0 : i32
      %145 = tpu.memref_slice %arg3[%143, %c0_i32_59] : memref<512x128xf32, #tpu.memory_space<any>> -> memref<1x128xf32, #tpu.memory_space<any>>
      %c0_i32_60 = arith.constant 0 : i32
      %146 = tpu.memref_slice %arg10[%144, %c0_i32_60] : memref<16x128xf32, #tpu.memory_space<vmem>> -> memref<1x128xf32, #tpu.memory_space<vmem>>
      %147 = tpu.memref_slice %arg11[%77] : memref<2x!tpu.dma_semaphore, #tpu.memory_space<semaphore_mem>> -> memref<1x!tpu.dma_semaphore, #tpu.memory_space<semaphore_mem>>
      %148 = tpu.memref_squeeze %147 : memref<1x!tpu.dma_semaphore, #tpu.memory_space<semaphore_mem>> -> memref<!tpu.dma_semaphore, #tpu.memory_space<semaphore_mem>>
      tpu.enqueue_dma source(%145 : memref<1x128xf32, #tpu.memory_space<any>>) target(%146 : memref<1x128xf32, #tpu.memory_space<vmem>>) target_semaphore(%148 : memref<!tpu.dma_semaphore, #tpu.memory_space<semaphore_mem>>)
      %c7_i32 = arith.constant 7 : i32
      %149 = arith.addi %85, %c7_i32 : i32
      %150 = arith.addi %81, %149 : i32
      %151 = arith.index_cast %150 : i32 to index
      %152 = memref.load %arg2[%151] : memref<16xi32, #tpu.memory_space<smem>>
      %153 = arith.addi %82, %149 : i32
      %c0_i32_61 = arith.constant 0 : i32
      %154 = tpu.memref_slice %arg3[%152, %c0_i32_61] : memref<512x128xf32, #tpu.memory_space<any>> -> memref<1x128xf32, #tpu.memory_space<any>>
      %c0_i32_62 = arith.constant 0 : i32
      %155 = tpu.memref_slice %arg10[%153, %c0_i32_62] : memref<16x128xf32, #tpu.memory_space<vmem>> -> memref<1x128xf32, #tpu.memory_space<vmem>>
      %156 = tpu.memref_slice %arg11[%77] : memref<2x!tpu.dma_semaphore, #tpu.memory_space<semaphore_mem>> -> memref<1x!tpu.dma_semaphore, #tpu.memory_space<semaphore_mem>>
      %157 = tpu.memref_squeeze %156 : memref<1x!tpu.dma_semaphore, #tpu.memory_space<semaphore_mem>> -> memref<!tpu.dma_semaphore, #tpu.memory_space<semaphore_mem>>
      tpu.enqueue_dma source(%154 : memref<1x128xf32, #tpu.memory_space<any>>) target(%155 : memref<1x128xf32, #tpu.memory_space<vmem>>) target_semaphore(%157 : memref<!tpu.dma_semaphore, #tpu.memory_space<semaphore_mem>>)
      %c1_i32_63 = arith.constant 1 : i32
    } else {
    }
    %c8_i32_9 = arith.constant 8 : i32
    %20 = arith.muli %9, %c8_i32_9 : i32
    %21 = tpu.assume_multiple %20, 8 : i32
    %c0_i32_10 = arith.constant 0 : i32
    %c0_i32_11 = arith.constant 0 : i32
    %22 = tpu.memref_slice %arg3[%c0_i32_10, %c0_i32_11] : memref<512x128xf32, #tpu.memory_space<any>> -> memref<8x128xf32, #tpu.memory_space<any>>
    %c0_i32_12 = arith.constant 0 : i32
    %23 = tpu.memref_slice %arg10[%21, %c0_i32_12] : memref<16x128xf32, #tpu.memory_space<vmem>> -> memref<8x128xf32, #tpu.memory_space<vmem>>
    %24 = tpu.memref_slice %arg11[%9] : memref<2x!tpu.dma_semaphore, #tpu.memory_space<semaphore_mem>> -> memref<1x!tpu.dma_semaphore, #tpu.memory_space<semaphore_mem>>
    %25 = tpu.memref_squeeze %24 : memref<1x!tpu.dma_semaphore, #tpu.memory_space<semaphore_mem>> -> memref<!tpu.dma_semaphore, #tpu.memory_space<semaphore_mem>>
    tpu.wait_dma2 semaphore(%25 : memref<!tpu.dma_semaphore, #tpu.memory_space<semaphore_mem>>) src(%22 : memref<8x128xf32, #tpu.memory_space<any>>) dst(%23 : memref<8x128xf32, #tpu.memory_space<vmem>>)
    %26 = arith.index_cast %21 : i32 to index
    %c0 = arith.constant 0 : index
    %27 = vector.load %arg10[%26, %c0] : memref<16x128xf32, #tpu.memory_space<vmem>>, vector<8x128xf32>
    %c0_13 = arith.constant 0 : index
    %c0_14 = arith.constant 0 : index
    %28 = vector.load %arg4[%c0_13, %c0_14] : memref<8x128xf32, #tpu.memory_space<vmem>>, vector<8x128xf32>
    %c0_15 = arith.constant 0 : index
    %c0_16 = arith.constant 0 : index
    %29 = vector.load %arg8[%c0_15, %c0_16] : memref<8x1xi32, #tpu.memory_space<vmem>>, vector<8x1xi32>
    %c0_17 = arith.constant 0 : index
    %c0_18 = arith.constant 0 : index
    %30 = vector.load %arg5[%c0_17, %c0_18] : memref<2x128xf32, #tpu.memory_space<vmem>>, vector<2x128xf32>
    %31 = vector.extract_strided_slice %30 {offsets = [0, 0], sizes = [1, 128], strides = [1, 1]} : vector<2x128xf32> to vector<1x128xf32>
    %32 = vector.extract_strided_slice %30 {offsets = [1, 0], sizes = [1, 128], strides = [1, 1]} : vector<2x128xf32> to vector<1x128xf32>
    %33 = arith.sitofp %29 : vector<8x1xi32> to vector<8x1xf32>
    %34 = arith.subf %32, %31 : vector<1x128xf32>
    %35 = vector.broadcast %33 : vector<8x1xf32> to vector<8x128xf32>
    %36 = vector.broadcast %34 : vector<1x128xf32> to vector<8x128xf32>
    %37 = arith.mulf %35, %36 : vector<8x128xf32>
    %38 = vector.broadcast %31 : vector<1x128xf32> to vector<8x128xf32>
    %39 = arith.addf %38, %37 : vector<8x128xf32>
    %40 = arith.addf %27, %28 : vector<8x128xf32>
    %41 = arith.addf %40, %39 : vector<8x128xf32>
    %cst = arith.constant dense<0.000000e+00> : vector<8xf32>
    %42 = vector.multi_reduction <add>, %41, %cst [1] : vector<8x128xf32> to vector<8xf32>
    %43 = vector.shape_cast %42 : vector<8xf32> to vector<8x1xf32>
    %cst_19 = arith.constant 1.280000e+02 : f32
    %44 = vector.broadcast %cst_19 : f32 to vector<8x1xf32>
    %45 = arith.divf %43, %44 : vector<8x1xf32>
    %46 = vector.broadcast %45 : vector<8x1xf32> to vector<8x128xf32>
    %47 = arith.subf %41, %46 : vector<8x128xf32>
    %48 = arith.mulf %47, %47 : vector<8x128xf32>
    %cst_20 = arith.constant dense<0.000000e+00> : vector<8xf32>
    %49 = vector.multi_reduction <add>, %48, %cst_20 [1] : vector<8x128xf32> to vector<8xf32>
    %50 = vector.shape_cast %49 : vector<8xf32> to vector<8x1xf32>
    %cst_21 = arith.constant 1.280000e+02 : f32
    %51 = vector.broadcast %cst_21 : f32 to vector<8x1xf32>
    %52 = arith.divf %50, %51 : vector<8x1xf32>
    %53 = vector.broadcast %45 : vector<8x1xf32> to vector<8x128xf32>
    %54 = arith.subf %41, %53 : vector<8x128xf32>
    %cst_22 = arith.constant 9.99999996E-13 : f32
    %55 = vector.broadcast %cst_22 : f32 to vector<8x1xf32>
    %56 = arith.addf %52, %55 : vector<8x1xf32>
    %57 = math.rsqrt %56 : vector<8x1xf32>
    %58 = vector.broadcast %57 : vector<8x1xf32> to vector<8x128xf32>
    %59 = arith.mulf %54, %58 : vector<8x128xf32>
    %c0_23 = arith.constant 0 : index
    %c0_24 = arith.constant 0 : index
    %60 = vector.load %arg6[%c0_23, %c0_24] : memref<1x128xf32, #tpu.memory_space<vmem>>, vector<1x128xf32>
    %61 = vector.broadcast %60 : vector<1x128xf32> to vector<8x128xf32>
    %62 = arith.mulf %59, %61 : vector<8x128xf32>
    %c0_25 = arith.constant 0 : index
    %c0_26 = arith.constant 0 : index
    %63 = vector.load %arg7[%c0_25, %c0_26] : memref<1x128xf32, #tpu.memory_space<vmem>>, vector<1x128xf32>
    %64 = vector.broadcast %63 : vector<1x128xf32> to vector<8x128xf32>
    %65 = arith.addf %62, %64 : vector<8x128xf32>
    %c0_27 = arith.constant 0 : index
    %c0_28 = arith.constant 0 : index
    %66 = vector.load %arg9[%c0_27, %c0_28] : memref<8x128xf32, #tpu.memory_space<vmem>>, vector<8x128xf32>
    tpu.vector_store %arg9[%c0_27, %c0_28], %65 {strides = array<i32>} : memref<8x128xf32, #tpu.memory_space<vmem>>, vector<8x128xf32>,
    return
  }
  func.func @transform_1(%arg0: i32, %arg1: i32, %arg2: memref<16xi32, #tpu.memory_space<smem>>) -> (i32, i32) {
    %c0_i32 = arith.constant 0 : i32
    %c0_i32_0 = arith.constant 0 : i32
    return %arg0, %c0_i32 : i32, i32
  }
  func.func @transform_2(%arg0: i32, %arg1: i32, %arg2: memref<16xi32, #tpu.memory_space<smem>>) -> (i32, i32) {
    %c0_i32 = arith.constant 0 : i32
    %c0_i32_0 = arith.constant 0 : i32
    %c0_i32_1 = arith.constant 0 : i32
    return %c0_i32, %c0_i32_0 : i32, i32
  }
  func.func @transform_3(%arg0: i32, %arg1: i32, %arg2: memref<16xi32, #tpu.memory_space<smem>>) -> (i32, i32) {
    %c0_i32 = arith.constant 0 : i32
    %c0_i32_0 = arith.constant 0 : i32
    %c0_i32_1 = arith.constant 0 : i32
    return %c0_i32, %c0_i32_0 : i32, i32
  }
  func.func @transform_4(%arg0: i32, %arg1: i32, %arg2: memref<16xi32, #tpu.memory_space<smem>>) -> (i32, i32) {
    %c0_i32 = arith.constant 0 : i32
    %c0_i32_0 = arith.constant 0 : i32
    %c0_i32_1 = arith.constant 0 : i32
    return %c0_i32, %c0_i32_0 : i32, i32
  }
  func.func @transform_5(%arg0: i32, %arg1: i32, %arg2: memref<16xi32, #tpu.memory_space<smem>>) -> (i32, i32) {
    %c1_i32 = arith.constant 1 : i32
    %0 = arith.muli %arg1, %c1_i32 : i32
    %1 = arith.addi %0, %arg0 : i32
    %c0_i32 = arith.constant 0 : i32
    %c0_i32_0 = arith.constant 0 : i32
    return %1, %c0_i32 : i32, i32
  }
  func.func @transform_6(%arg0: i32, %arg1: i32, %arg2: memref<16xi32, #tpu.memory_space<smem>>) -> (i32, i32) {
    %c1_i32 = arith.constant 1 : i32
    %0 = arith.muli %arg1, %c1_i32 : i32
    %1 = arith.addi %0, %arg0 : i32
    %c0_i32 = arith.constant 0 : i32
    %c0_i32_0 = arith.constant 0 : i32
    return %1, %c0_i32 : i32, i32
  }
}

</mosaic_0001>

<bundles_post_ra>
// kernel: tpu_custom_call.1
= control target key start
LH: loop header
LB: loop body
LE: loop exit
PB: predicated region body
PF: predicated region fallthrough
CT: control target
= control target key end

     0   :  { %s1509_s27 = smov [#allocation5]   ;;  %s2132_s0 = inlined_call_operand.vmem [shape: s32[16], index: 0, kind: input, shape index: {}]   ;;  %s2133_s1 = inlined_call_operand.hbm [shape: f32[512,128], index: 1, kind: input, shape index: {}]   ;;  %s2134_s2 = inlined_call_operand.vmem [shape: f32[8,128], index: 2, kind: input, shape index: {}]   ;;  %s2135_s3 = inlined_call_operand.vmem [shape: f32[2,128], index: 3, kind: input, shape index: {}]   ;;  %s2136_s4 = inlined_call_operand.vmem [shape: f32[1,128], index: 4, kind: input, shape index: {}]   ;;  %s2137_s5 = inlined_call_operand.vmem [shape: f32[1,128], index: 5, kind: input, shape index: {}]   ;;  %s2138_s6 = inlined_call_operand.vmem [shape: s32[16,1], index: 6, kind: input, shape index: {}]   ;;  %s2139_s7 = inlined_call_operand.hbm [shape: f32[16,128], index: 7, kind: output, shape index: {}]  }
   0x1   :  { %2162 = sst [smem:[#allocation72_spill]] %s2136_s4  ;;  %s13_s26 = sshll.u32 %s2132_s0, 4  ;;  %s14_s26 = int_to_ptr.vmem [resolvable:$true] %s13_s26 }
   0x2   :  { %2163 = sst [smem:[#allocation73_spill]] %s2137_s5 }
   0x3   :  { %2164 = sst [smem:[#allocation74_spill]] %s2138_s6 }
   0x4   :  { %2165 = sst [smem:[#allocation75_spill]] %s2139_s7 }
   0x5   :  { %16 = dma.vmem_to_smem %s14_s26, 16, %s1509_s27, [#allocation4] }
   0x6   :  { %1477 = dma.done.wait [#allocation4], 16 }
   0x7   :  { %1478 = vsyncadd [#allocation4], 4294967280 }
   0x8   :  { %19 = sfence }
   0x9   :  { %20 = vsyncpa [#allocation7], 0 }
   0xa   :  { %22 = vsyncpa [#allocation7 + $0x1], 0  ;;  %s1563_s28 = smov 0   ;;  %s1565_s29 = smov 0  }
   0xb   :  { %s1567_s30 = smov 0   ;;  %s1569_s8 = smov 0  }
   0xc   :  { %s1571_s9 = smov 0   ;;  %s1573_s10 = smov 0  }
   0xd LB: > { %2166 = sst [smem:[#allocation61_spill]] %s1487_s28  ;;  %s805_s0 = sadd.s32 4294967295, %s1507_s10   ;;  %s1507_s10 = sphi %s1573_s10, %s28_s10   ;;  %s1503_s9 = sphi %s1571_s9, %s2218_s9   ;;  %s1499_s8 = sphi %s1569_s8, %s2217_s8   ;;  %s1495_s30 = sphi %s1567_s30, %s2216_s30   ;;  %s1491_s29 = sphi %s1565_s29, %s2220_s29   ;;  %s1487_s28 = sphi %s1563_s28, %s2219_s28  }
   0xe   : > { %2167 = sst [smem:[#allocation62_spill]] %s1495_s30  ;;  %s806_s11 = sadd.s32 4294967294, %s1507_s10  }
   0xf   : > { %2168 = sst [smem:[#allocation63_spill]] %s1503_s9  ;;  %s37_s12 = sadd.s32 1, %s1503_s9 }
  0x10   : > { %2169 = sst [smem:[#allocation64_spill]] %s1507_s10  ;;  %s166_s13 = sadd.s32 1, %s1495_s30 }
  0x11   : > { %p38_p0 = scmp.ge.s32.totalorder %s37_s12, 2  ;;  %p176_p1 = scmp.ne.s32.totalorder %s1495_s30, %s1491_s29 }
  0x12   : > { %p177_p2 = scmp.eq.s32.totalorder %s805_s0, 1  ;;  %p182_p3 = scmp.ne.s32.totalorder %s1491_s29, %s1487_s28 }
  0x13   : > { %s2222_s12 = smov (%p38_p0, %s37_s12), 0  ;;  %p183_p5 = scmp.eq.s32.totalorder %s806_s11, 1 }
  0x14   : > { %2170 = sst [smem:[#allocation65_spill]] %s2222_s12  ;;  %p1603_p4 = por %p177_p2, %p176_p1 }
  0x15   : > { %s163_s15 = ssub.s32 %s1503_s9, %s2222_s12  ;;  %p810_p6 = scmp.ge.s32.totalorder %s1507_s10, 1 }
  0x16   : > { %s2171_s14 = scalar_select %p1603_p4, 1, 0 }
  0x17   : > { %p164_p7 = scmp.eq.s32.totalorder %s163_s15, 0  ;;  %p1610_p8 = por %p183_p5, %p182_p3 }
  0x18   : > { %2172 = sst [smem:[#allocation66_spill]] %s2171_s14  ;;  %p226_p9 = scmp.lt.s32.totalorder %s1507_s10, 3 }
  0x19   : > { %s2173_s16 = scalar_select %p1610_p8, 1, 0 }
  0x1a   : > { %s1616_s17 = scalar_select %p164_p7, %s1495_s30, %s166_s13  }
  0x1b   : > { %2174 = sst [smem:[#allocation67_spill]] %s2173_s16  ;;  %p227_p10 = pnand %p810_p6, %p226_p9 }
  0x1c   : > { %2175 = sst [smem:[#allocation68_spill]] %s1616_s17 }
  0x1d   : > { %230 = sbr.rel (%p227_p10) target bundleno = 827 (0x33b), region = 40 }
  0x22   : > { %s2140_s18 = sand.u32 1, %s1491_s29   ;;  %p263_p11 = scmp.lt.s32.totalorder %s1499_s8, 1 }
  0x23   : > { %s1622_s19 = sshll.u32 %s2140_s18, 3  ;;  %p269_p12 = scmp.lt.s32.totalorder %s1499_s8, 0 }
  0x24   : > { %s270_s20 = ssub.s32 0, %s1499_s8  ;;  %s1629_s23 = sshll.u32 %s1499_s8, 3 }
  0x25   : > { %s264_s21 = scalar_select %p263_p11, %s1499_s8, 1 }
  0x26   : > { %s813_s22 = smin.u32 %s1499_s8, %s270_s20  ;;  %s2176_s6 = sld [smem:[#allocation74_spill]] }
  0x27   : > { %s812_s24 = sshll.u32 %s264_s21, 3  ;;  %s272_s25 = sand.u32 1, %s813_s22  }
  0x28   : > { %s273_s11 = ssub.s32 0, %s272_s25  ;;  %p896_p13 = scmp.eq.s32.totalorder %s1499_s8, 0 }
  0x29   : > { %s2224_s11 = smov (!%p269_p12, %s273_s11), %s272_s25  ;;  %s303_s21 = sadd.s32 1, %s1629_s23 }
  0x2a   : > { %p815_p0 = scmp.lt.s32.totalorder %s2224_s11, 0  ;;  %s279_s13 = sadd.s32 2, %s2224_s11 }
  0x2b   : > { %s841_s15 = scalar_select %p896_p13, [#allocation5], [#allocation42] }
  0x2c   : > { %s1634_s0 = scalar_lea.vmem %s2176_s6, %s812_s24  ;;  %s2226_s13 = smov (!%p815_p0, %s279_s13), %s2224_s11 }
  0x2d   : > { %s842_s20 = scalar_select %p896_p13, %s1629_s23, 0 }
  0x2e   : > { %s2143_s18 = smov [#allocation2]   ;;  %s2228_s21 = smov (!%p896_p13, %s303_s21), 0 }
  0x2f   : > { %s288_s22 = sld [smem:[%s841_s15 + %s842_s20]]  ;;  %s299_s26 = sshll.u32 %s2143_s18, 4  ;;  %s300_s26 = int_to_ptr.vmem [resolvable:$true] %s299_s26 }
  0x30   : > { %s844_s24 = scalar_select %p896_p13, [#allocation5], [#allocation43] }
  0x31   : > { %s1511_s25 = smov [#allocation2 + $0x1]   ;;  %s320_s6 = sadd.s32 2, %s1629_s23 }
  0x32   : > { %s1650_s27 = sshll.u32 %s1511_s25, 4  ;;  %s304_s11 = sld [smem:[%s844_s24 + %s2228_s21]]  ;;  %s317_s27 = int_to_ptr.vmem [resolvable:$true] %s1650_s27 }
  0x33   : > { %s1512_s17 = smov [#allocation2 + $0x2]   ;;  %s1665_s25 = scalar_lea.hbm %s2133_s1, 512 }
  0x34   : > { %s1657_s18 = sshll.u32 %s1512_s17, 4 }
  0x35   : > { %s289_s15 = scalar_lea.hbm %s2133_s1, %s288_s22  ;;  %2177 = sst [smem:[#allocation69_spill]] %s1657_s18 }
  0x36   : > { %s297_s20 = sshll.u32 %s289_s15, 4  ;;  %s298_s20 = int_to_ptr.hbm [resolvable:$true] %s297_s20 }
  0x37   : > { %s977_s30 = sshra.s32 %s298_s20, 4  ;;  %s978_s30 = int_to_ptr.hbm [resolvable:$true] %s977_s30 }
  0x38   : > { %s979_s16 = scalar_lea.hbm %s978_s30, 1  ;;  %p984_p5 = scmp.lt.s32.totalorder %s978_s30, %s2133_s1 }
  0x39   : > { %p980_p1 = scmp.ne.s32.totalorder %s978_s30, %s979_s16  ;;  %p985_p6 = scmp.lt.s32.totalorder %s1665_s25, %s979_s16 }
  0x3b   : > { %p981_p2 = pnand %p980_p1, %p896_p13  ;;  %p986_p7 = por %p985_p6, %p984_p5 }
  0x3d   : > { %p982_p3 = pneg %p981_p2 }
  0x3f   : > { %p987_p9 = pnand %p986_p7, %p982_p3 }
  0x41   : > { %990 = shalt.err (!%p987_p9)  }
  0x42   : > { %843 = dma.hbm_to_vmem [thread:$0]  (%p896_p13), %s298_s20, 16, %s300_s26, [#allocation3] }
  0x43   : > { %s847_s17 = scalar_select %p896_p13, [#allocation5], [#allocation44] }
  0x44   : > { %s305_s21 = scalar_lea.hbm %s2133_s1, %s304_s11  ;;  %s337_s24 = sadd.s32 3, %s1629_s23 }
  0x45   : > { %s314_s9 = sshll.u32 %s305_s21, 4  ;;  %s1513_s30 = smov [#allocation2 + $0x3]   ;;  %s315_s9 = int_to_ptr.hbm [resolvable:$true] %s314_s9 }
  0x46   : > { %s1679_s16 = sshll.u32 %s1513_s30, 4  ;;  %s1005_s12 = sshra.s32 %s315_s9, 4  ;;  %s1006_s12 = int_to_ptr.hbm [resolvable:$true] %s1005_s12 }
  0x47   : > { %2178 = sst [smem:[#allocation70_spill]] %s1679_s16  ;;  %s1007_s18 = scalar_lea.hbm %s1006_s12, 1 }
  0x48   : > { %p1008_p10 = scmp.ne.s32.totalorder %s1006_s12, %s1007_s18  ;;  %p1012_p0 = scmp.lt.s32.totalorder %s1006_s12, %s2133_s1 }
  0x49   : > { %p1013_p1 = scmp.lt.s32.totalorder %s1665_s25, %s1007_s18 }
  0x4a   : > { %p1009_p11 = pnand %p1008_p10, %p896_p13 }
  0x4b   : > { %p1014_p2 = por %p1013_p1, %p1012_p0 }
  0x4c   : > { %p1010_p12 = pneg %p1009_p11 }
  0x4e   : > { %p1015_p3 = pnand %p1014_p2, %p1010_p12 }
  0x50   : > { %1018 = shalt.err (!%p1015_p3)  }
  0x51   : > { %846 = dma.hbm_to_vmem [thread:$0]  (%p896_p13), %s315_s9, 16, %s317_s27, [#allocation3] }
  0x52   : > { %s2230_s6 = smov (!%p896_p13, %s320_s6), 0  ;;  %s2232_s24 = smov (!%p896_p13, %s337_s24), 0 }
  0x53   : > { %s850_s18 = scalar_select %p896_p13, [#allocation5], [#allocation45] }
  0x54   : > { %s321_s11 = sld [smem:[%s847_s17 + %s2230_s6]]  ;;  %s354_s22 = sadd.s32 4, %s1629_s23 }
  0x55   : > { %s338_s15 = sld [smem:[%s850_s18 + %s2232_s24]]  ;;  %s1514_s21 = smov [#allocation2 + $0x4]  }
  0x56   : > { %s1701_s30 = sshll.u32 %s1514_s21, 4  ;;  %s2234_s22 = smov (!%p896_p13, %s354_s22), 0 }
  0x57   : > { %2179 = sst [smem:[#allocation71_spill]] %s1701_s30 }
  0x58   : > { %s853_s27 = scalar_select %p896_p13, [#allocation5], [#allocation46] }
  0x5a   : > { %s322_s26 = scalar_lea.hbm %s2133_s1, %s321_s11  ;;  %s1711_s17 = sld [smem:[%s853_s27 + %s2234_s22]] }
  0x5b   : > { %s331_s6 = sshll.u32 %s322_s26, 4  ;;  %s332_s6 = int_to_ptr.hbm [resolvable:$true] %s331_s6 }
  0x5c   : > { %s1033_s24 = sshra.s32 %s332_s6, 4  ;;  %s1034_s24 = int_to_ptr.hbm [resolvable:$true] %s1033_s24 }
  0x5d   : > { %s1035_s18 = scalar_lea.hbm %s1034_s24, 1  ;;  %p1040_p9 = scmp.lt.s32.totalorder %s1034_s24, %s2133_s1 }
  0x5e   : > { %p1036_p5 = scmp.ne.s32.totalorder %s1034_s24, %s1035_s18  ;;  %p1041_p10 = scmp.lt.s32.totalorder %s1665_s25, %s1035_s18 }
  0x60   : > { %p1037_p6 = pnand %p1036_p5, %p896_p13  ;;  %p1042_p11 = por %p1041_p10, %p1040_p9 }
  0x62   : > { %p1038_p7 = pneg %p1037_p6 }
  0x64   : > { %p1043_p12 = pnand %p1042_p11, %p1038_p7 }
  0x66   : > { %1046 = shalt.err (!%p1043_p12)  }
  0x67   : > { %s2180_s11 = sld [smem:[#allocation69_spill]]  ;;  %s339_s12 = scalar_lea.hbm %s2133_s1, %s338_s15 }
  0x68   : > { %s348_s26 = sshll.u32 %s339_s12, 4  ;;  %s1515_s20 = smov [#allocation2 + $0x5]   ;;  %s349_s26 = int_to_ptr.hbm [resolvable:$true] %s348_s26 }
  0x69   : > { %s1727_s30 = sshll.u32 %s1515_s20, 4  ;;  %s1061_s16 = sshra.s32 %s349_s26, 4  ;;  %s1062_s16 = int_to_ptr.hbm [resolvable:$true] %s1061_s16 }
  0x6a   : > { %2182 = sst [smem:[#allocation69_spill]] %s1727_s30  ;;  %s1063_s24 = scalar_lea.hbm %s1062_s16, 1 }
  0x6b   : > { %p1064_p0 = scmp.ne.s32.totalorder %s1062_s16, %s1063_s24  ;;  %p1068_p3 = scmp.lt.s32.totalorder %s1062_s16, %s2133_s1 }
  0x6c   : > { %p1069_p5 = scmp.lt.s32.totalorder %s1665_s25, %s1063_s24 }
  0x6d   : > { %s2181_s22 = int_to_ptr.vmem [resolvable:$true] %s2180_s11  ;;  %p1065_p1 = pnand %p1064_p0, %p896_p13 }
  0x6e   : > { %849 = dma.hbm_to_vmem [thread:$0]  (%p896_p13), %s332_s6, 16, %s2181_s22, [#allocation3] }
  0x6f   : > { %p1066_p2 = pneg %p1065_p1  ;;  %p1070_p6 = por %p1069_p5, %p1068_p3 }
  0x71   : > { %p1071_p7 = pnand %p1070_p6, %p1066_p2 }
  0x73   : > { %1074 = shalt.err (!%p1071_p7)  }
  0x74   : > { %s2183_s15 = sld [smem:[#allocation70_spill]]  ;;  %s356_s22 = scalar_lea.hbm %s2133_s1, %s1711_s17 }
  0x75   : > { %s388_s27 = sadd.s32 6, %s1629_s23  ;;  %s365_s9 = sshll.u32 %s356_s22, 4  ;;  %s366_s9 = int_to_ptr.hbm [resolvable:$true] %s365_s9 }
  0x76   : > { %s1516_s12 = smov [#allocation2 + $0x6]   ;;  %s1089_s24 = sshra.s32 %s366_s9, 4  ;;  %s1090_s24 = int_to_ptr.hbm [resolvable:$true] %s1089_s24 }
  0x77   : > { %s1745_s16 = sshll.u32 %s1516_s12, 4  ;;  %s1091_s18 = scalar_lea.hbm %s1090_s24, 1 }
  0x78   : > { %2185 = sst [smem:[#allocation70_spill]] %s1745_s16  ;;  %p1092_p9 = scmp.ne.s32.totalorder %s1090_s24, %s1091_s18 }
  0x79   : > { %p1096_p12 = scmp.lt.s32.totalorder %s1090_s24, %s2133_s1  ;;  %p1097_p0 = scmp.lt.s32.totalorder %s1665_s25, %s1091_s18 }
  0x7a   : > { %s2184_s20 = int_to_ptr.vmem [resolvable:$true] %s2183_s15  ;;  %p1093_p10 = pnand %p1092_p9, %p896_p13 }
  0x7b   : > { %852 = dma.hbm_to_vmem [thread:$0]  (%p896_p13), %s349_s26, 16, %s2184_s20, [#allocation3] }
  0x7c   : > { %p1094_p11 = pneg %p1093_p10  ;;  %p1098_p1 = por %p1097_p0, %p1096_p12 }
  0x7e   : > { %p1099_p2 = pnand %p1098_p1, %p1094_p11 }
  0x80   : > { %1102 = shalt.err (!%p1099_p2)  }
  0x81   : > { %s2186_s17 = sld [smem:[#allocation71_spill]]  ;;  %s2188_s21 = sadd.s32 5, %s1629_s23 }
  0x82   : > { %s856_s20 = scalar_select %p896_p13, [#allocation5], [#allocation47] }
  0x83   : > { %s2236_s21 = smov (!%p896_p13, %s2188_s21), 0  ;;  %s2238_s27 = smov (!%p896_p13, %s388_s27), 0 }
  0x84   : > { %s859_s11 = scalar_select %p896_p13, [#allocation5], [#allocation48] }
  0x85   : > { %s372_s22 = sld [smem:[%s856_s20 + %s2236_s21]]  ;;  %s405_s12 = sadd.s32 7, %s1629_s23 }
  0x86   : > { %s389_s24 = sld [smem:[%s859_s11 + %s2238_s27]]  ;;  %s1517_s18 = smov [#allocation2 + $0x7]  }
  0x87   : > { %s2187_s26 = int_to_ptr.vmem [resolvable:$true] %s2186_s17  ;;  %s1769_s6 = sshll.u32 %s1517_s18, 4 }
  0x88   : > { %855 = dma.hbm_to_vmem [thread:$0]  (%p896_p13), %s366_s9, 16, %s2187_s26, [#allocation3] }
  0x89   : > { %2189 = sst [smem:[#allocation71_spill]] %s1769_s6  ;;  %s2240_s12 = smov (!%p896_p13, %s405_s12), 0 }
  0x8a   : > { %s862_s9 = scalar_select %p896_p13, [#allocation5], [#allocation49] }
  0x8b   : > { %s373_s26 = scalar_lea.hbm %s2133_s1, %s372_s22  ;;  %s1782_s16 = sadd.s32 1, %s1499_s8 }
  0x8c   : > { %s382_s20 = sshll.u32 %s373_s26, 4  ;;  %s1779_s21 = sld [smem:[%s862_s9 + %s2240_s12]]  ;;  %s383_s20 = int_to_ptr.hbm [resolvable:$true] %s382_s20 }
  0x8d   : > { %s1117_s27 = sshra.s32 %s383_s20, 4  ;;  %s1118_s27 = int_to_ptr.hbm [resolvable:$true] %s1117_s27 }
  0x8e   : > { %s1119_s11 = scalar_lea.hbm %s1118_s27, 1  ;;  %p1124_p7 = scmp.lt.s32.totalorder %s1118_s27, %s2133_s1 }
  0x8f   : > { %p1120_p3 = scmp.ne.s32.totalorder %s1118_s27, %s1119_s11  ;;  %p1125_p9 = scmp.lt.s32.totalorder %s1665_s25, %s1119_s11 }
  0x91   : > { %p1121_p5 = pnand %p1120_p3, %p896_p13  ;;  %p1126_p10 = por %p1125_p9, %p1124_p7 }
  0x93   : > { %p1122_p6 = pneg %p1121_p5 }
  0x95   : > { %p1127_p11 = pnand %p1126_p10, %p1122_p6 }
  0x97   : > { %1130 = shalt.err (!%p1127_p11)  }
  0x98   : > { %s2190_s22 = sld [smem:[#allocation69_spill]]  ;;  %s390_s17 = scalar_lea.hbm %s2133_s1, %s389_s24 }
  0x99   : > { %s399_s26 = sshll.u32 %s390_s17, 4  ;;  %p897_p12 = scmp.lt.s32.totalorder %s1782_s16, 2  ;;  %s400_s26 = int_to_ptr.hbm [resolvable:$true] %s399_s26 }
  0x9a   : > { %p427_p0 = scmp.lt.s32.totalorder %s1782_s16, 0  ;;  %s1145_s30 = sshra.s32 %s400_s26, 4  ;;  %s1146_s30 = int_to_ptr.hbm [resolvable:$true] %s1145_s30 }
  0x9b   : > { %s1147_s27 = scalar_lea.hbm %s1146_s30, 1  ;;  %p1152_p5 = scmp.lt.s32.totalorder %s1146_s30, %s2133_s1 }
  0x9c   : > { %p1148_p1 = scmp.ne.s32.totalorder %s1146_s30, %s1147_s27  ;;  %p1153_p6 = scmp.lt.s32.totalorder %s1665_s25, %s1147_s27 }
  0x9e   : > { %s2191_s12 = int_to_ptr.vmem [resolvable:$true] %s2190_s22  ;;  %p1149_p2 = pnand %p1148_p1, %p896_p13 }
  0x9f   : > { %858 = dma.hbm_to_vmem [thread:$0]  (%p896_p13), %s383_s20, 16, %s2191_s12, [#allocation3] }
  0xa0   : > { %p1150_p3 = pneg %p1149_p2  ;;  %p1154_p7 = por %p1153_p6, %p1152_p5 }
  0xa2   : > { %p1155_p9 = pnand %p1154_p7, %p1150_p3 }
  0xa4   : > { %1158 = shalt.err (!%p1155_p9)  }
  0xa5   : > { %s2192_s24 = sld [smem:[#allocation70_spill]]  ;;  %s407_s9 = scalar_lea.hbm %s2133_s1, %s1779_s21 }
  0xa6   : > { %s428_s15 = ssub.s32 0, %s1782_s16  ;;  %s416_s17 = sshll.u32 %s407_s9, 4  ;;  %s417_s17 = int_to_ptr.hbm [resolvable:$true] %s416_s17 }
  0xa7   : > { %s819_s30 = smin.u32 %s428_s15, %s1782_s16  ;;  %s1173_s11 = sshra.s32 %s417_s17, 4  ;;  %s1174_s11 = int_to_ptr.hbm [resolvable:$true] %s1173_s11 }
  0xa8   : > { %s430_s27 = sand.u32 1, %s819_s30   ;;  %s1175_s18 = scalar_lea.hbm %s1174_s11, 1 }
  0xa9   : > { %p1176_p10 = scmp.ne.s32.totalorder %s1174_s11, %s1175_s18  ;;  %p1180_p2 = scmp.lt.s32.totalorder %s1174_s11, %s2133_s1 }
  0xaa   : > { %p1181_p3 = scmp.lt.s32.totalorder %s1665_s25, %s1175_s18 }
  0xab   : > { %s2193_s20 = int_to_ptr.vmem [resolvable:$true] %s2192_s24  ;;  %p1177_p11 = pnand %p1176_p10, %p896_p13 }
  0xac   : > { %861 = dma.hbm_to_vmem [thread:$0]  (%p896_p13), %s400_s26, 16, %s2193_s20, [#allocation3] }
  0xad   : > { %p1178_p1 = pneg %p1177_p11  ;;  %p1182_p5 = por %p1181_p3, %p1180_p2 }
  0xaf   : > { %p1183_p6 = pnand %p1182_p5, %p1178_p1 }
  0xb1   : > { %1186 = shalt.err (!%p1183_p6)  }
  0xb2   : > { %s2194_s21 = sld [smem:[#allocation71_spill]]  ;;  %s431_s20 = ssub.s32 0, %s430_s27 }
  0xb3   : > { %s1826_s22 = sadd.s32 8, %s1629_s23  ;;  %s2242_s20 = smov (!%p427_p0, %s431_s20), %s430_s27 }
  0xb4   : > { %s866_s6 = scalar_select %p897_p12, [#allocation5], [#allocation50] }
  0xb5   : > { %p821_p7 = scmp.lt.s32.totalorder %s2242_s20, 0  ;;  %s437_s8 = sadd.s32 2, %s2242_s20 }
  0xb6   : > { %s867_s12 = scalar_select %p897_p12, %s1826_s22, 0 }
  0xb7   : > { %s2244_s8 = smov (!%p821_p7, %s437_s8), %s2242_s20 }
  0xb8   : > { %s2195_s26 = int_to_ptr.vmem [resolvable:$true] %s2194_s21  ;;  %s442_s9 = sld [smem:[%s866_s6 + %s867_s12]] }
  0xb9   : > { %864 = dma.hbm_to_vmem [thread:$0]  (%p896_p13), %s417_s17, 16, %s2195_s26, [#allocation3] }
  0xba   : > { %s823_s15 = sshll.u32 %s2244_s8, 3  ;;  %s477_s6 = sadd.s32 2, %s1826_s22 }
  0xbb   : > { %s1835_s30 = scalar_lea.vmem [#allocation2], %s823_s15  ;;  %s1855_s15 = scalar_lea.sflag [#allocation3], %s2244_s8 }
  0xbc   : > { %s455_s17 = sshll.u32 %s1835_s30, 4  ;;  %s730_s18 = scalar_lea.vmem %s1835_s30, 1 [#allocation2]  ;;  %s1847_s17 = int_to_ptr.vmem [resolvable:$true] %s455_s17 }
  0xbd   : > { %s1842_s27 = scalar_select %p897_p12, [#allocation5], [#allocation51] }
  0xbe   : > { %s443_s26 = scalar_lea.hbm %s2133_s1, %s442_s9  ;;  %s1853_s12 = sshll.u32 %s730_s18, 4 }
  0xbf   : > { %s1849_s20 = sshll.u32 %s443_s26, 4  ;;  %2196 = sst [smem:[#allocation69_spill]] %s1853_s12  ;;  %s454_s20 = int_to_ptr.hbm [resolvable:$true] %s1849_s20 }
  0xc0   : > { %s1201_s11 = sshra.s32 %s454_s20, 4  ;;  %s1202_s11 = int_to_ptr.hbm [resolvable:$true] %s1201_s11 }
  0xc1   : > { %s1203_s28 = scalar_lea.hbm %s1202_s11, 1  ;;  %p1208_p10 = scmp.lt.s32.totalorder %s1202_s11, %s2133_s1 }
  0xc2   : > { %p1204_p13 = scmp.ne.s32.totalorder %s1202_s11, %s1203_s28  ;;  %p1209_p11 = scmp.lt.s32.totalorder %s1665_s25, %s1203_s28 }
  0xc4   : > { %p1205_p0 = pnand %p1204_p13, %p897_p12  ;;  %p1210_p1 = por %p1209_p11, %p1208_p10 }
  0xc6   : > { %p1206_p9 = pneg %p1205_p0 }
  0xc8   : > { %p1211_p2 = pnand %p1210_p1, %p1206_p9 }
  0xca   : > { %1214 = shalt.err (!%p1211_p2)  }
  0xcb   : > { %s1215_s18 = sshra.s32 %s1847_s17, 4  ;;  %s2197_s21 = smov [#allocation2]   ;;  %s1216_s18 = int_to_ptr.vmem [resolvable:$true] %s1215_s18 }
  0xcc   : > { %s1217_s8 = scalar_lea.vmem %s1216_s18, 1  ;;  %s1867_s26 = scalar_lea.vmem %s2197_s21, 16 }
  0xcd   : > { %p1218_p3 = scmp.ne.s32.totalorder %s1216_s18, %s1217_s8  ;;  %p1222_p7 = scmp.lt.s32.totalorder %s1216_s18, [#allocation2] }
  0xce   : > { %p1223_p13 = scmp.lt.s32.totalorder %s1867_s26, %s1217_s8 }
  0xcf   : > { %p1219_p5 = pnand %p1218_p3, %p897_p12 }
  0xd0   : > { %p1224_p0 = por %p1223_p13, %p1222_p7 }
  0xd1   : > { %p1220_p6 = pneg %p1219_p5 }
  0xd3   : > { %p1225_p8 = pnand %p1224_p0, %p1220_p6 }
  0xd5   : > { %1228 = shalt.err (!%p1225_p8)  }
  0xd6   : > { %868 = dma.hbm_to_vmem [thread:$0]  (%p897_p12), %s454_s20, 16, %s1847_s17, %s1855_s15 }
  0xd7   : > { %s2198_s28 = sadd.s32 1, %s1826_s22  ;;  %s2248_s6 = smov (!%p897_p12, %s477_s6), 0 }
  0xd8   : > { %s2246_s28 = smov (!%p897_p12, %s2198_s28), 0  ;;  %s734_s9 = scalar_lea.vmem %s1835_s30, 2 [#allocation2] }
  0xd9   : > { %s872_s11 = scalar_select %p897_p12, [#allocation5], [#allocation52] }
  0xda   : > { %s460_s24 = sld [smem:[%s1842_s27 + %s2246_s28]]  ;;  %s495_s18 = sadd.s32 3, %s1826_s22 }
  0xdb   : > { %s1888_s8 = sld [smem:[%s872_s11 + %s2248_s6]]  ;;  %s738_s21 = scalar_lea.vmem %s1835_s30, 3 [#allocation2] }
  0xdc   : > { %s875_s10 = scalar_select %p897_p12, [#allocation5], [#allocation53] }
  0xdd   : > { %s2250_s18 = smov (!%p897_p12, %s495_s18), 0  ;;  %s1898_s27 = sshll.u32 %s734_s9, 4  ;;  %s492_s27 = int_to_ptr.vmem [resolvable:$true] %s1898_s27 }
  0xde   : > { %s1900_s12 = sld [smem:[%s875_s10 + %s2250_s18]]  ;;  %s1902_s14 = sshll.u32 %s738_s21, 4  ;;  %s510_s14 = int_to_ptr.vmem [resolvable:$true] %s1902_s14 }
  0xe0   : > { %s462_s5 = scalar_lea.hbm %s2133_s1, %s460_s24 }
  0xe1   : > { %s471_s28 = sshll.u32 %s462_s5, 4  ;;  %s472_s28 = int_to_ptr.hbm [resolvable:$true] %s471_s28 }
  0xe2   : > { %s1229_s6 = sshra.s32 %s472_s28, 4  ;;  %s1230_s6 = int_to_ptr.hbm [resolvable:$true] %s1229_s6 }
  0xe3   : > { %s1231_s11 = scalar_lea.hbm %s1230_s6, 1  ;;  %p1236_p11 = scmp.lt.s32.totalorder %s1230_s6, %s2133_s1 }
  0xe4   : > { %p1232_p8 = scmp.ne.s32.totalorder %s1230_s6, %s1231_s11  ;;  %p1237_p1 = scmp.lt.s32.totalorder %s1665_s25, %s1231_s11 }
  0xe6   : > { %p1233_p9 = pnand %p1232_p8, %p897_p12  ;;  %p1238_p2 = por %p1237_p1, %p1236_p11 }
  0xe8   : > { %p1234_p10 = pneg %p1233_p9 }
  0xea   : > { %p1239_p3 = pnand %p1238_p2, %p1234_p10 }
  0xec   : > { %1242 = shalt.err (!%p1239_p3)  }
  0xed   : > { %s2199_s5 = sld [smem:[#allocation69_spill]] }
  0xf3   : > { %s2200_s10 = int_to_ptr.vmem [resolvable:$true] %s2199_s5 }
  0xf4   : > { %s1243_s24 = sshra.s32 %s2200_s10, 4  ;;  %s1244_s24 = int_to_ptr.vmem [resolvable:$true] %s1243_s24 }
  0xf5   : > { %s1245_s9 = scalar_lea.vmem %s1244_s24, 1  ;;  %p1250_p13 = scmp.lt.s32.totalorder %s1244_s24, [#allocation2] }
  0xf6   : > { %p1246_p5 = scmp.ne.s32.totalorder %s1244_s24, %s1245_s9  ;;  %p1251_p0 = scmp.lt.s32.totalorder %s1867_s26, %s1245_s9 }
  0xf8   : > { %p1247_p6 = pnand %p1246_p5, %p897_p12  ;;  %p1252_p8 = por %p1251_p0, %p1250_p13 }
  0xfa   : > { %p1248_p7 = pneg %p1247_p6 }
  0xfc   : > { %p1253_p9 = pnand %p1252_p8, %p1248_p7 }
  0xfe   : > { %1256 = shalt.err (!%p1253_p9)  }
  0xff   : > { %s2201_s4 = smov %s2200_s10  ;;  %s480_s21 = scalar_lea.hbm %s2133_s1, %s1888_s8 }
 0x100   : > { %871 = dma.hbm_to_vmem [thread:$0]  (%p897_p12), %s472_s28, 16, %s2201_s4, %s1855_s15 }
 0x101   : > { %s489_s17 = sshll.u32 %s480_s21, 4  ;;  %s742_s20 = scalar_lea.vmem %s1835_s30, 4 [#allocation2]  ;;  %s490_s17 = int_to_ptr.hbm [resolvable:$true] %s489_s17 }
 0x102   : > { %s1257_s6 = sshra.s32 %s490_s17, 4  ;;  %s1258_s6 = int_to_ptr.hbm [resolvable:$true] %s1257_s6 }
 0x103   : > { %s1259_s11 = scalar_lea.hbm %s1258_s6, 1  ;;  %p1264_p2 = scmp.lt.s32.totalorder %s1258_s6, %s2133_s1 }
 0x104   : > { %p1260_p10 = scmp.ne.s32.totalorder %s1258_s6, %s1259_s11  ;;  %p1265_p3 = scmp.lt.s32.totalorder %s1665_s25, %s1259_s11 }
 0x106   : > { %p1261_p11 = pnand %p1260_p10, %p897_p12  ;;  %p1266_p5 = por %p1265_p3, %p1264_p2 }
 0x108   : > { %p1262_p1 = pneg %p1261_p11 }
 0x10a   : > { %p1267_p6 = pnand %p1266_p5, %p1262_p1 }
 0x10c   : > { %1270 = shalt.err (!%p1267_p6)  }
 0x10d   : > { %s1271_s8 = sshra.s32 %s492_s27, 4  ;;  %s1272_s8 = int_to_ptr.vmem [resolvable:$true] %s1271_s8 }
 0x10e   : > { %s1273_s28 = scalar_lea.vmem %s1272_s8, 1  ;;  %p1278_p8 = scmp.lt.s32.totalorder %s1272_s8, [#allocation2] }
 0x10f   : > { %p1274_p7 = scmp.ne.s32.totalorder %s1272_s8, %s1273_s28  ;;  %p1279_p9 = scmp.lt.s32.totalorder %s1867_s26, %s1273_s28 }
 0x111   : > { %p1275_p13 = pnand %p1274_p7, %p897_p12  ;;  %p1280_p10 = por %p1279_p9, %p1278_p8 }
 0x113   : > { %p1276_p0 = pneg %p1275_p13 }
 0x115   : > { %p1281_p11 = pnand %p1280_p10, %p1276_p0 }
 0x117   : > { %1284 = shalt.err (!%p1281_p11)  }
 0x118   : > { %874 = dma.hbm_to_vmem [thread:$0]  (%p897_p12), %s490_s17, 16, %s492_s27, %s1855_s15 }
 0x119   : > { %s498_s4 = scalar_lea.hbm %s2133_s1, %s1900_s12  ;;  %s513_s7 = sadd.s32 4, %s1826_s22 }
 0x11a   : > { %s507_s18 = sshll.u32 %s498_s4, 4  ;;  %s1944_s21 = sshll.u32 %s742_s20, 4  ;;  %s508_s18 = int_to_ptr.hbm [resolvable:$true] %s507_s18 }
 0x11b   : > { %2202 = sst [smem:[#allocation70_spill]] %s1944_s21  ;;  %s531_s6 = sadd.s32 5, %s1826_s22 }
 0x11c   : > { %s1285_s11 = sshra.s32 %s508_s18, 4  ;;  %s1286_s11 = int_to_ptr.hbm [resolvable:$true] %s1285_s11 }
 0x11d   : > { %s1287_s5 = scalar_lea.hbm %s1286_s11, 1  ;;  %p1292_p5 = scmp.lt.s32.totalorder %s1286_s11, %s2133_s1 }
 0x11e   : > { %p1288_p1 = scmp.ne.s32.totalorder %s1286_s11, %s1287_s5  ;;  %p1293_p6 = scmp.lt.s32.totalorder %s1665_s25, %s1287_s5 }
 0x120   : > { %p1289_p2 = pnand %p1288_p1, %p897_p12  ;;  %p1294_p7 = por %p1293_p6, %p1292_p5 }
 0x122   : > { %p1290_p3 = pneg %p1289_p2 }
 0x124   : > { %p1295_p13 = pnand %p1294_p7, %p1290_p3 }
 0x126   : > { %1298 = shalt.err (!%p1295_p13)  }
 0x127   : > { %s1299_s12 = sshra.s32 %s510_s14, 4  ;;  %s1300_s12 = int_to_ptr.vmem [resolvable:$true] %s1299_s12 }
 0x128   : > { %s1301_s27 = scalar_lea.vmem %s1300_s12, 1  ;;  %p1306_p10 = scmp.lt.s32.totalorder %s1300_s12, [#allocation2] }
 0x129   : > { %p1302_p0 = scmp.ne.s32.totalorder %s1300_s12, %s1301_s27  ;;  %p1307_p11 = scmp.lt.s32.totalorder %s1867_s26, %s1301_s27 }
 0x12b   : > { %p1303_p8 = pnand %p1302_p0, %p897_p12  ;;  %p1308_p1 = por %p1307_p11, %p1306_p10 }
 0x12d   : > { %p1304_p9 = pneg %p1303_p8 }
 0x12f   : > { %p1309_p2 = pnand %p1308_p1, %p1304_p9 }
 0x131   : > { %1312 = shalt.err (!%p1309_p2)  }
 0x132   : > { %877 = dma.hbm_to_vmem [thread:$0]  (%p897_p12), %s508_s18, 16, %s510_s14, %s1855_s15 }
 0x133   : > { %s878_s17 = scalar_select %p897_p12, [#allocation5], [#allocation54] }
 0x134   : > { %s2252_s7 = smov (!%p897_p12, %s513_s7), 0  ;;  %s2254_s6 = smov (!%p897_p12, %s531_s6), 0 }
 0x135   : > { %s881_s20 = scalar_select %p897_p12, [#allocation5], [#allocation55] }
 0x136   : > { %s514_s28 = sld [smem:[%s878_s17 + %s2252_s7]]  ;;  %s746_s24 = scalar_lea.vmem %s1835_s30, 5 [#allocation2] }
 0x137   : > { %s549_s9 = sadd.s32 6, %s1826_s22  ;;  %s1976_s4 = sld [smem:[%s881_s20 + %s2254_s6]] }
 0x138   : > { %s750_s11 = scalar_lea.vmem %s1835_s30, 6 [#allocation2]  ;;  %s2256_s9 = smov (!%p897_p12, %s549_s9), 0 }
 0x139   : > { %s884_s14 = scalar_select %p897_p12, [#allocation5], [#allocation56] }
 0x13a   : > { %s1986_s8 = sshll.u32 %s746_s24, 4  ;;  %s1990_s27 = sshll.u32 %s750_s11, 4  ;;  %s546_s8 = int_to_ptr.vmem [resolvable:$true] %s1986_s8  ;;  %s564_s27 = int_to_ptr.vmem [resolvable:$true] %s1990_s27 }
 0x13b   : > { %s1988_s12 = sld [smem:[%s884_s14 + %s2256_s9]] }
 0x13c   : > { %s516_s10 = scalar_lea.hbm %s2133_s1, %s514_s28 }
 0x13d   : > { %s525_s7 = sshll.u32 %s516_s10, 4  ;;  %s526_s7 = int_to_ptr.hbm [resolvable:$true] %s525_s7 }
 0x13e   : > { %s1313_s6 = sshra.s32 %s526_s7, 4  ;;  %s1314_s6 = int_to_ptr.hbm [resolvable:$true] %s1313_s6 }
 0x13f   : > { %s1315_s17 = scalar_lea.hbm %s1314_s6, 1  ;;  %p1320_p7 = scmp.lt.s32.totalorder %s1314_s6, %s2133_s1 }
 0x140   : > { %p1316_p3 = scmp.ne.s32.totalorder %s1314_s6, %s1315_s17  ;;  %p1321_p13 = scmp.lt.s32.totalorder %s1665_s25, %s1315_s17 }
 0x142   : > { %p1317_p5 = pnand %p1316_p3, %p897_p12  ;;  %p1322_p0 = por %p1321_p13, %p1320_p7 }
 0x144   : > { %p1318_p6 = pneg %p1317_p5 }
 0x146   : > { %p1323_p8 = pnand %p1322_p0, %p1318_p6 }
 0x148   : > { %1326 = shalt.err (!%p1323_p8)  }
 0x149   : > { %s2203_s28 = sld [smem:[#allocation70_spill]] }
 0x14f   : > { %s2204_s24 = int_to_ptr.vmem [resolvable:$true] %s2203_s28 }
 0x150   : > { %s1327_s9 = sshra.s32 %s2204_s24, 4  ;;  %s1328_s9 = int_to_ptr.vmem [resolvable:$true] %s1327_s9 }
 0x151   : > { %s1329_s11 = scalar_lea.vmem %s1328_s9, 1  ;;  %p1334_p1 = scmp.lt.s32.totalorder %s1328_s9, [#allocation2] }
 0x152   : > { %p1330_p9 = scmp.ne.s32.totalorder %s1328_s9, %s1329_s11  ;;  %p1335_p2 = scmp.lt.s32.totalorder %s1867_s26, %s1329_s11 }
 0x154   : > { %p1331_p10 = pnand %p1330_p9, %p897_p12  ;;  %p1336_p3 = por %p1335_p2, %p1334_p1 }
 0x156   : > { %p1332_p11 = pneg %p1331_p10 }
 0x158   : > { %p1337_p5 = pnand %p1336_p3, %p1332_p11 }
 0x15a   : > { %1340 = shalt.err (!%p1337_p5)  }
 0x15b   : > { %s2205_s21 = smov %s2204_s24  ;;  %s534_s5 = scalar_lea.hbm %s2133_s1, %s1976_s4 }
 0x15c   : > { %880 = dma.hbm_to_vmem [thread:$0]  (%p897_p12), %s526_s7, 16, %s2205_s21, %s1855_s15 }
 0x15d   : > { %s543_s10 = sshll.u32 %s534_s5, 4  ;;  %s567_s6 = sadd.s32 7, %s1826_s22  ;;  %s544_s10 = int_to_ptr.hbm [resolvable:$true] %s543_s10 }
 0x15e   : > { %s1341_s17 = sshra.s32 %s544_s10, 4  ;;  %s1342_s17 = int_to_ptr.hbm [resolvable:$true] %s1341_s17 }
 0x15f   : > { %s1343_s20 = scalar_lea.hbm %s1342_s17, 1  ;;  %p1348_p0 = scmp.lt.s32.totalorder %s1342_s17, %s2133_s1 }
 0x160   : > { %p1344_p6 = scmp.ne.s32.totalorder %s1342_s17, %s1343_s20  ;;  %p1349_p8 = scmp.lt.s32.totalorder %s1665_s25, %s1343_s20 }
 0x162   : > { %p1345_p7 = pnand %p1344_p6, %p897_p12  ;;  %p1350_p9 = por %p1349_p8, %p1348_p0 }
 0x164   : > { %p1346_p13 = pneg %p1345_p7 }
 0x166   : > { %p1351_p10 = pnand %p1350_p9, %p1346_p13 }
 0x168   : > { %1354 = shalt.err (!%p1351_p10)  }
 0x169   : > { %s1355_s4 = sshra.s32 %s546_s8, 4  ;;  %s1356_s4 = int_to_ptr.vmem [resolvable:$true] %s1355_s4 }
 0x16a   : > { %s1357_s7 = scalar_lea.vmem %s1356_s4, 1  ;;  %p1362_p3 = scmp.lt.s32.totalorder %s1356_s4, [#allocation2] }
 0x16b   : > { %p1358_p11 = scmp.ne.s32.totalorder %s1356_s4, %s1357_s7  ;;  %p1363_p5 = scmp.lt.s32.totalorder %s1867_s26, %s1357_s7 }
 0x16d   : > { %p1359_p1 = pnand %p1358_p11, %p897_p12  ;;  %p1364_p6 = por %p1363_p5, %p1362_p3 }
 0x16f   : > { %p1360_p2 = pneg %p1359_p1 }
 0x171   : > { %p1365_p7 = pnand %p1364_p6, %p1360_p2 }
 0x173   : > { %1368 = shalt.err (!%p1365_p7)  }
 0x174   : > { %883 = dma.hbm_to_vmem [thread:$0]  (%p897_p12), %s544_s10, 16, %s546_s8, %s1855_s15 }
 0x175   : > { %s552_s21 = scalar_lea.hbm %s2133_s1, %s1988_s12  ;;  %s831_s14 = sshll.u32 %s2226_s13, 3 }
 0x176   : > { %s561_s18 = sshll.u32 %s552_s21, 4  ;;  %s562_s18 = int_to_ptr.hbm [resolvable:$true] %s561_s18 }
 0x177   : > { %s1369_s5 = sshra.s32 %s562_s18, 4  ;;  %s1370_s5 = int_to_ptr.hbm [resolvable:$true] %s1369_s5 }
 0x178   : > { %s1371_s17 = scalar_lea.hbm %s1370_s5, 1  ;;  %p1376_p9 = scmp.lt.s32.totalorder %s1370_s5, %s2133_s1 }
 0x179   : > { %p1372_p13 = scmp.ne.s32.totalorder %s1370_s5, %s1371_s17  ;;  %p1377_p10 = scmp.lt.s32.totalorder %s1665_s25, %s1371_s17 }
 0x17b   : > { %p1373_p0 = pnand %p1372_p13, %p897_p12  ;;  %p1378_p11 = por %p1377_p10, %p1376_p9 }
 0x17d   : > { %p1374_p8 = pneg %p1373_p0 }
 0x17f   : > { %p1379_p1 = pnand %p1378_p11, %p1374_p8 }
 0x181   : > { %1382 = shalt.err (!%p1379_p1)  }
 0x182   : > { %s1383_s8 = sshra.s32 %s564_s27, 4  ;;  %s1384_s8 = int_to_ptr.vmem [resolvable:$true] %s1383_s8 }
 0x183   : > { %s1385_s12 = scalar_lea.vmem %s1384_s8, 1  ;;  %p1390_p6 = scmp.lt.s32.totalorder %s1384_s8, [#allocation2] }
 0x184   : > { %p1386_p2 = scmp.ne.s32.totalorder %s1384_s8, %s1385_s12  ;;  %p1391_p7 = scmp.lt.s32.totalorder %s1867_s26, %s1385_s12 }
 0x186   : > { %p1387_p3 = pnand %p1386_p2, %p897_p12  ;;  %p1392_p13 = por %p1391_p7, %p1390_p6 }
 0x188   : > { %p1388_p5 = pneg %p1387_p3 }
 0x18a   : > { %p1393_p0 = pnand %p1392_p13, %p1388_p5 }
 0x18c   : > { %1396 = shalt.err (!%p1393_p0)  }
 0x18d   : > { %886 = dma.hbm_to_vmem [thread:$0]  (%p897_p12), %s562_s18, 16, %s564_s27, %s1855_s15 }
 0x18e   : > { %s887_s10 = scalar_select %p897_p12, [#allocation5], [#allocation57] }
 0x18f   : > { %s2258_s6 = smov (!%p897_p12, %s567_s6), 0  ;;  %s754_s4 = scalar_lea.vmem %s1835_s30, 7 [#allocation2] }
 0x190   : > { %s568_s24 = sld [smem:[%s887_s10 + %s2258_s6]]  ;;  %s2055_s7 = sshll.u32 %s754_s4, 4  ;;  %s582_s7 = int_to_ptr.vmem [resolvable:$true] %s2055_s7 }
 0x196   : > { %s570_s21 = scalar_lea.hbm %s2133_s1, %s568_s24 }
 0x197   : > { %s579_s5 = sshll.u32 %s570_s21, 4  ;;  %s580_s5 = int_to_ptr.hbm [resolvable:$true] %s579_s5 }
 0x198   : > { %s1397_s17 = sshra.s32 %s580_s5, 4  ;;  %s1398_s17 = int_to_ptr.hbm [resolvable:$true] %s1397_s17 }
 0x199   : > { %s1399_s27 = scalar_lea.hbm %s1398_s17, 1  ;;  %p1404_p11 = scmp.lt.s32.totalorder %s1398_s17, %s2133_s1 }
 0x19a   : > { %p1400_p8 = scmp.ne.s32.totalorder %s1398_s17, %s1399_s27  ;;  %p1405_p1 = scmp.lt.s32.totalorder %s1665_s25, %s1399_s27 }
 0x19c   : > { %p1401_p9 = pnand %p1400_p8, %p897_p12  ;;  %p1406_p2 = por %p1405_p1, %p1404_p11 }
 0x19e   : > { %p1402_p10 = pneg %p1401_p9 }
 0x1a0   : > { %p1407_p3 = pnand %p1406_p2, %p1402_p10 }
 0x1a2   : > { %1410 = shalt.err (!%p1407_p3)  }
 0x1a3   : > { %s1411_s30 = sshra.s32 %s582_s7, 4  ;;  %s1412_s30 = int_to_ptr.vmem [resolvable:$true] %s1411_s30 }
 0x1a4   : > { %s1413_s18 = scalar_lea.vmem %s1412_s30, 1  ;;  %p1418_p13 = scmp.lt.s32.totalorder %s1412_s30, [#allocation2] }
 0x1a5   : > { %p1414_p5 = scmp.ne.s32.totalorder %s1412_s30, %s1413_s18  ;;  %p1419_p0 = scmp.lt.s32.totalorder %s1867_s26, %s1413_s18 }
 0x1a7   : > { %p1415_p6 = pnand %p1414_p5, %p897_p12  ;;  %p1420_p8 = por %p1419_p0, %p1418_p13 }
 0x1a9   : > { %p1416_p7 = pneg %p1415_p6 }
 0x1ab   : > { %p1421_p9 = pnand %p1420_p8, %p1416_p7 }
 0x1ad   : > { %1424 = shalt.err (!%p1421_p9)  }
 0x1ae   : > { %889 = dma.hbm_to_vmem [thread:$0]  (%p897_p12), %s580_s5, 16, %s582_s7, %s1855_s15 }
 0x1af   : > { %s257_s25 = scalar_lea.vmem [#allocation6], %s1622_s19  ;;  %s586_s20 = scalar_lea.vmem [#allocation2], %s831_s14 }
 0x1b0   : > { %s587_s28 = scalar_lea.sflag [#allocation3], %s2226_s13 }
 0x1b1   : > { %1479 = dma.done.wait %s587_s28, 128 }
 0x1b2   : > { %1480 = vsyncadd %s587_s28, 4294967168  ;;  %v1518_v0 = vmov 0   ;;  %v593_v1 = vld [vmem:[%s1634_s0] sm:$0xff]  ;;  %v1519_v15 = vmov 128.0   ;;  %s2206_s14 = sld [smem:[#allocation72_spill]]  ;;  %s663_s5 = sshll.u32 %s257_s25, 4  ;;  %s664_s5 = int_to_ptr.vmem [resolvable:$true] %s663_s5 }
 0x1b3   : > { %958 = vset.pattern.permute.xlu0 %v1518_v0  ;;  %v595_v2 = vcvt.s32.f32 %v593_v1  ;;  %v594_v3 = vld [vmem:[%s2135_s3] sm:$0x3]  ;;  %961 = vrcp.f32 %v1519_v15  ;;  %s2207_s24 = sld [smem:[#allocation75_spill]]  ;;  %s2210_s27 = sand.u32 1, %s1491_s29  }
 0x1b4   : > { %v597_v4 = vrot.slane %v594_v3, 7  ;;  %v591_v7 = vld [vmem:[%s586_s20] sm:$0xff]  ;;  %v607_v9 = vperm.slane %v594_v3, 0  ;;  %s2209_s21 = sld [smem:[#allocation73_spill]]  ;;  %s650_s22 = scalar_lea.sflag [#allocation7], %s2210_s27 }
 0x1b5   : > { %602 = vperm.xlu0 %958, %v595_v2   ;;  %v592_v8 = vld [vmem:[%s2134_s2] sm:$0xff] }
 0x1b6   : > { %v599_v5 = vsub.f32 %v594_v3, %v597_v4  ;;  %v609_v12 = vadd.f32 %v592_v8, %v591_v7 }
 0x1b8   : > { %v605_v6 = vperm.slane %v599_v5, 1  ;;  %v959_v35 = vld [vmem:[%s2206_s14] ss:$0 sm:$0xff] }
 0x1b9   : > { %v962_v16 = vpop.eup %961  ;;  %s661_s4 = scalar_lea.hbm %s2207_s24, %s1629_s23  ;;  %s1445_s20 = scalar_lea.hbm %s2207_s24, 16 }
 0x1ba   : > { %v614_v17 = vmul.f32 128.0, %v962_v16  ;;  %vm618_vm0 = vweird.f32 %v962_v16  ;;  %v960_v38 = vld [vmem:[%s2209_s21] ss:$0 sm:$0xff]  ;;  %s665_s17 = sshll.u32 %s661_s4, 4  ;;  %s666_s17 = int_to_ptr.hbm [resolvable:$true] %s665_s17 }
 0x1bb   : > { %s1439_s6 = sshra.s32 %s666_s17, 4  ;;  %s1440_s6 = int_to_ptr.hbm [resolvable:$true] %s1439_s6 }
 0x1bc   : > { %v615_v18 = vsub.f32 1.0, %v614_v17  ;;  %s1441_s23 = scalar_lea.hbm %s1440_s6, 8  ;;  %p1446_p1 = scmp.lt.s32.totalorder %s1440_s6, %s2207_s24 }
 0x1bd   : > { %p1442_p12 = scmp.ne.s32.totalorder %s1440_s6, %s1441_s23  ;;  %p1447_p2 = scmp.lt.s32.totalorder %s1445_s20, %s1441_s23 }
 0x1be   : > { %v616_v19 = vmul.f32 %v962_v16, %v615_v18 }
 0x1bf   : > { %p1443_p10 = pnand %p1442_p12, %p1603_p4  ;;  %p1448_p3 = por %p1447_p2, %p1446_p1 }
 0x1c0   : > { %v617_v20 = vadd.f32 %v962_v16, %v616_v19 }
 0x1c1   : > { %p1444_p11 = pneg %p1443_p10 }
 0x1c2   : > { %v619_v21 = vsel %vm618_vm0, %v962_v16, %v617_v20 }
 0x1c3   : > { %p1449_p5 = pnand %p1448_p3, %p1444_p11 }
 0x227   : > { %v603_v10 = vpop.permute.xlu0 %602 }
 0x228   : > { %v606_v11 = vmul.f32 %v605_v6, %v603_v10 }
 0x22a   : > { %v608_v13 = vadd.f32 %v607_v9, %v606_v11 }
 0x22c   : > { %v610_v14 = vadd.f32 %v609_v12, %v608_v13 }
 0x22e   : > { %611 = vadd.xlane.f32.xlu0 %v610_v14 }
 0x2a1   : > { %v612_v22 = vpop.xlane.xlu0 %611 }
 0x2a2   : > { %v620_v23 = vmul.f32 %v619_v21, %v612_v22 }
 0x2a4   : > { %v621_v24 = vsub.f32 %v610_v14, %v620_v23 }
 0x2a6   : > { %v622_v25 = vmul.f32 %v621_v24, %v621_v24 }
 0x2a8   : > { %623 = vadd.xlane.f32.xlu1 %v622_v25 }
 0x31b   : > { %v624_v26 = vpop.xlane.xlu1 %623 }
 0x31c   : > { %v625_v27 = vmul.f32 %v624_v26, %v619_v21 }
 0x31e   : > { %v626_v28 = vadd.f32 1e-12, %v625_v27 }
 0x320   : > { %963 = vrsqrt.f32 %v626_v28  ;;  %vm633_vm2 = vweird.f32 %v626_v28 }
 0x326   : > { %v964_v29 = vpop.eup %963 }
 0x327   : > { %v628_v30 = vmul.f32 %v964_v29, %v626_v28  ;;  %vm634_vm1 = vweird.f32 %v964_v29 }
 0x328   : > { %vm635_vm3 = vmor %vm633_vm2, %vm634_vm1 }
 0x329   : > { %v629_v31 = vmul.f32 %v964_v29, %v628_v30 }
 0x32b   : > { %v630_v32 = vmul.f32 0.5, %v629_v31 }
 0x32d   : > { %v631_v33 = vsub.f32 1.5, %v630_v32 }
 0x32f   : > { %v632_v34 = vmul.f32 %v964_v29, %v631_v33 }
 0x331   : > { %v636_v36 = vsel %vm635_vm3, %v964_v29, %v632_v34 }
 0x332   : > { %v637_v37 = vmul.f32 %v636_v36, %v621_v24 }
 0x334   : > { %v642_v39 = vmul.f32 %v959_v35, %v637_v37 }
 0x336   : > { %v647_v40 = vadd.f32 %v960_v38, %v642_v39 }
 0x338   : > { %648 = vst [vmem:[%s257_s25] sm:$0xff] %v647_v40 }
 0x339   : > { %1452 = shalt.err (!%p1449_p5)
}
 0x33a   : > { %890 = dma.vmem_to_hbm [thread:$0]  (%p1603_p4), %s664_s5, 128, %s666_s17, %s650_s22  }
 0x33b PF: > { %s2211_s19 = sld [smem:[#allocation64_spill]] }
 0x33c   : > { %s2212_s25 = sld [smem:[#allocation61_spill]] }
 0x33d   : > { %s2213_s8 = sld [smem:[#allocation67_spill]] }
 0x341   : > { %p898_p6 = scmp.ge.s32.totalorder %s2211_s19, 2 }
 0x342   : > { %s677_s16 = sand.u32 1, %s2212_s25  }
 0x343   : > { %p2214_p7 = scmp.ne.s32.totalorder %s2213_s8, 0  ;;  %s678_s15 = scalar_lea.sflag [#allocation7], %s677_s16 }
 0x345   : > { %p893_p13 = pnand %p898_p6, %p2214_p7 }
 0x347   : > { %p894_p0 = pneg %p893_p13 }
 0x349   : > { %1482 = dma.done.wait (%p894_p0), %s678_s15, 128  }
 0x34a   : > { %1484 = vsyncadd (%p894_p0), %s678_s15, 4294967168  ;;  %s28_s10 = sadd.s32 1, %s2211_s19   ;;  %s2215_s0 = sld [smem:[#allocation62_spill]] }
 0x34b   : > { %p25_p8 = scmp.ge.s32.totalorder %s28_s10, 4   ;;  %s2216_s30 = sld [smem:[#allocation68_spill]] }
 0x34c   : > { %s2217_s8 = sld [smem:[#allocation63_spill]]  ;;  %s2219_s28 = smov %s1491_s29 }
 0x34d   : > { %s2218_s9 = sld [smem:[#allocation65_spill]]  ;;  %27 = sbr.rel (!%p25_p8) target bundleno = 13 (0xd), region = 185 }
 0x350   : > { %s2220_s29 = smov %s2215_s0 }
 0x352   :  { %684 = vsyncpa [#allocation7], 1 }
 0x353   :  { %686 = vsyncpa [#allocation7 + $0x1], 1 }
 0x354   :  { %687 = vsyncmov [#allocation3] }
 0x357   :  { %s688_s13 = vpop.sfrf %687 }
 0x358   :  { %p836_p4 = scmp.ne.s32.totalorder %s688_s13, 0 }
 0x35a   :  { %692 = shalt.err (%p836_p4)  }
 0x35b   :  { %694 = vsyncmov [#allocation3 + $0x1] }
 0x35e   :  { %s695_s14 = vpop.sfrf %694 }
 0x35f   :  { %p837_p9 = scmp.ne.s32.totalorder %s695_s14, 0 }
 0x361   :  { %699 = shalt.err (%p837_p9)  }

</bundles_post_ra>
